<compile_context>
chip_gen: v7x
topology: tpu7x:2x2x1
jax: 0.10.0
libtpu: 0.0.40
codegen_flags: <defaults>
</compile_context>

<pallas_src>
import functools

import jax
import jax.numpy as jnp
from jax.experimental import pallas as pl
from jax.experimental.pallas import tpu as pltpu


def _disp_unpack_kernel(x_ref, xup_ref, xdn_ref, w1_ref, b1_ref, w2_ref,
                        b2_ref, o_ref, xpad_ref, hpad_ref, *, TH, W):
    """One (batch, row-strip) step: conv3x3 + ReLU -> conv3x3 + sigmoid.

    x_ref   : (1, TH, W, Cin)  f32   strip rows [r0, r0+TH)
    xup_ref : (1, 2,  W, Cin)  f32   rows [r0-2, r0) (clamped view; zeroed at top)
    xdn_ref : (1, 2,  W, Cin)  f32   rows [r0+TH, r0+TH+2) (clamped; zeroed at bottom)
    w1_ref  : (9*Cin, Chid)    bf16  im2col conv1 weights
    b1_ref  : (1, Chid)        f32
    w2_ref  : (9*Chid, 16)     bf16  im2col conv2 weights
    b2_ref  : (1, 16)          f32
    o_ref   : (1, TH, W, 16)   f32
    xpad_ref: (TH+4, W+2, Cin) f32   zero-padded input slab (2-row halo)
    hpad_ref: (TH+2, W+2, Chid)f32   zero-padded hidden slab (1-row halo)
    """
    s = pl.program_id(1)
    n_strips = pl.num_programs(1)
    Cin = x_ref.shape[-1]
    Chid = b1_ref.shape[-1]
    Cout = b2_ref.shape[-1]
    M1 = (TH + 2) * W          # conv1 rows needed (strip + 1-row halo each side)
    M2 = TH * W                # conv2 (output) rows

    f32 = jnp.float32
    # Scalar keep-masks for the halo rows (never gated on program_id==0 alone:
    # computed per step, so it is correct under "parallel" megacore sharding).
    top_keep = jnp.where(s > 0, 1.0, 0.0).astype(f32)
    bot_keep = jnp.where(s < n_strips - 1, 1.0, 0.0).astype(f32)

    # ---- padded input slab: zero only the side-border columns ------------
    xpad_ref[:, 0:1, :] = jnp.zeros((TH + 4, 1, Cin), f32)
    xpad_ref[:, W + 1:W + 2, :] = jnp.zeros((TH + 4, 1, Cin), f32)
    xpad_ref[0:2, 1:W + 1, :] = xup_ref[0] * top_keep          # halo above
    xpad_ref[TH + 2:TH + 4, 1:W + 1, :] = xdn_ref[0] * bot_keep  # halo below
    xpad_ref[2:TH + 2, 1:W + 1, :] = x_ref[0]                  # strip interior

    # ---- conv1: one im2col matmul (+ bias, ReLU) --------------------------
    cols1 = [xpad_ref[dy:dy + TH + 2, dx:dx + W, :].reshape(M1, Cin)
             for dy in range(3) for dx in range(3)]
    slab1 = jnp.concatenate(cols1, axis=-1).astype(jnp.bfloat16)   # (M1, 9*Cin)
    h = jnp.dot(slab1, w1_ref[...], preferred_element_type=jnp.float32)
    h = jnp.maximum(h + b1_ref[...], 0.0)                          # f32 elementwise

    # ---- padded hidden slab (rows outside the image are exact zeros) -----
    h3 = h.reshape(TH + 2, W, Chid)
    hpad_ref[:, 0:1, :] = jnp.zeros((TH + 2, 1, Chid), f32)
    hpad_ref[:, W + 1:W + 2, :] = jnp.zeros((TH + 2, 1, Chid), f32)
    hpad_ref[0:1, 1:W + 1, :] = h3[0:1] * top_keep
    hpad_ref[TH + 1:TH + 2, 1:W + 1, :] = h3[TH + 1:TH + 2] * bot_keep
    hpad_ref[1:TH + 1, 1:W + 1, :] = h3[1:TH + 1]

    # ---- conv2: one im2col matmul (+ bias, sigmoid) ------------------------
    cols2 = [hpad_ref[dy:dy + TH, dx:dx + W, :].reshape(M2, Chid)
             for dy in range(3) for dx in range(3)]
    slab2 = jnp.concatenate(cols2, axis=-1).astype(jnp.bfloat16)   # (M2, 9*Chid)
    y = jnp.dot(slab2, w2_ref[...], preferred_element_type=jnp.float32)
    y = jax.nn.sigmoid(y + b2_ref[...])                            # f32 (EUP)

    o_ref[...] = y.reshape(1, TH, W, Cout)


def _pick_strip_rows(H, target=8):
    """Largest even divisor of H that is <= target (halo blocks are 2 rows)."""
    th = min(target, H)
    while th >= 2:
        if H % th == 0 and th % 2 == 0:
            return th
        th -= 1
    raise ValueError(f"H={H} must be even for row-strip tiling")


def pixel_shuffle_x4(y_nhwc):
    """PixelShuffle(4): (N, H, W, 16) -> NCHW (N, 1, 4H, 4W).

    out[n, 0, 4h+i, 4w+j] = y[n, h, w, i*4+j].  Pure layout plumbing; XLA
    fuses it into a single transpose pass.
    """
    N, H, W, C = y_nhwc.shape
    assert C == 16
    y = y_nhwc.reshape(N, H, W, 4, 4)          # (N, H, W, i, j)
    y = jnp.transpose(y, (0, 1, 3, 2, 4))      # (N, H, i, W, j)
    return y.reshape(N, 4 * H, 4 * W)[:, None, :, :]


def disp_unpack_forward(x_nchw, params, output_size=None, strip_rows=8):
    """Mirror of DispUnpack.forward (output_size unused, as in PyTorch)."""
    N, Cin, H, W = x_nchw.shape
    Chid = params["w1"].shape[-1]
    Cout = params["w2"].shape[-1]
    assert Cout == 16
    TH = _pick_strip_rows(H, strip_rows)
    n_strips = H // TH

    x = jnp.transpose(x_nchw, (0, 2, 3, 1))    # NCHW -> NHWC (channels last)

    # im2col weight layout: row index = (ky*3 + kx)*Cin + ci  (matches the
    # concatenation order of the 9 patches in the kernel).
    w1 = params["w1"].reshape(9 * Cin, Chid).astype(jnp.bfloat16)
    w2 = params["w2"].reshape(9 * Chid, Cout).astype(jnp.bfloat16)
    b1 = params["b1"].reshape(1, Chid).astype(jnp.float32)
    b2 = params["b2"].reshape(1, Cout).astype(jnp.float32)

    kernel = functools.partial(_disp_unpack_kernel, TH=TH, W=W)

    # VMEM budget: double-buffered in/out blocks + weights + padded scratch +
    # im2col slabs (f32 + bf16 copies), plus margin; capped below v7x physical.
    blk_in = (TH * W * Cin + 2 * 2 * W * Cin) * 4
    blk_out = TH * W * Cout * 4
    w_bytes = (9 * Cin * Chid + 9 * Chid * Cout) * 2 + (Chid + Cout) * 4
    scratch = ((TH + 4) * (W + 2) * Cin + (TH + 2) * (W + 2) * Chid) * 4
    slabs = ((TH + 2) * W * 9 * Cin + TH * W * 9 * Chid) * 6
    vmem_limit = int(min(2 * (blk_in + blk_out + w_bytes) + scratch + slabs
                         + (8 << 20), 48 << 20))

    cost = pl.CostEstimate(
        flops=2 * N * H * W * 9 * (Cin * Chid + Chid * Cout),
        transcendentals=N * H * W * Cout,
        bytes_accessed=(N * H * W * (Cin + Cout)) * 4 + (w1.size + w2.size) * 2)

    y = pl.pallas_call(
        kernel,
        out_shape=jax.ShapeDtypeStruct((N, H, W, Cout), jnp.float32),
        grid=(N, n_strips),
        in_specs=[
            # main strip rows [s*TH, s*TH+TH)
            pl.BlockSpec((1, TH, W, Cin), lambda n, s: (n, s, 0, 0)),
            # 2-row halo above: rows [s*TH-2, s*TH), clamped at the top edge
            pl.BlockSpec((1, 2, W, Cin),
                         lambda n, s: (n, jnp.maximum(s * (TH // 2) - 1, 0), 0, 0)),
            # 2-row halo below: rows [s*TH+TH, s*TH+TH+2), clamped at the bottom
            pl.BlockSpec((1, 2, W, Cin),
                         lambda n, s: (n, jnp.minimum((s + 1) * (TH // 2),
                                                      H // 2 - 1), 0, 0)),
            pl.BlockSpec((9 * Cin, Chid), lambda n, s: (0, 0)),
            pl.BlockSpec((1, Chid), lambda n, s: (0, 0)),
            pl.BlockSpec((9 * Chid, Cout), lambda n, s: (0, 0)),
            pl.BlockSpec((1, Cout), lambda n, s: (0, 0)),
        ],
        out_specs=pl.BlockSpec((1, TH, W, Cout), lambda n, s: (n, s, 0, 0)),
        scratch_shapes=[
            pltpu.VMEM((TH + 4, W + 2, Cin), jnp.float32),
            pltpu.VMEM((TH + 2, W + 2, Chid), jnp.float32),
        ],
        compiler_params=pltpu.CompilerParams(
            dimension_semantics=("parallel", "parallel"),
            vmem_limit_bytes=vmem_limit),
        cost_estimate=cost,
    )(x, x, x, w1, b1, w2, b2)

    return pixel_shuffle_x4(y)                 # NCHW (N, 1, 4H, 4W)


def _reference_forward(x_nchw, params):
    """Pure-JAX f32 reference (lax conv) for validation."""
    x = jnp.transpose(x_nchw, (0, 2, 3, 1))
    dn = jax.lax.conv_dimension_numbers(x.shape, params["w1"].shape,
                                        ("NHWC", "HWIO", "NHWC"))
    h = jax.lax.conv_general_dilated(x, params["w1"], (1, 1), "SAME",
                                     dimension_numbers=dn) + params["b1"]
    h = jnp.maximum(h, 0.0)
    dn2 = jax.lax.conv_dimension_numbers(h.shape, params["w2"].shape,
                                         ("NHWC", "HWIO", "NHWC"))
    y = jax.lax.conv_general_dilated(h, params["w2"], (1, 1), "SAME",
                                     dimension_numbers=dn2) + params["b2"]
    y = jax.nn.sigmoid(y)
    return pixel_shuffle_x4(y)


if __name__ == "__main__":
    # Small shapes consistent with the module (DispUnpack(input_dim, hidden_dim);
    # conv2 out-channels = 16 is fixed by PixelShuffle(4)).
    N, Cin, H, W = 2, 8, 16, 16
    hidden = 32

    key = jax.random.PRNGKey(0)
    k1, k2, k3, k4, kx = jax.random.split(key, 5)

    params = {
        "w1": (jax.random.normal(k1, (3, 3, Cin, hidden), jnp.float32) * 0.1),
        "b1": (jax.random.normal(k2, (hidden,), jnp.float32) * 0.01),
        "w2": (jax.random.normal(k3, (3, 3, hidden, 16), jnp.float32) * 0.1),
        "b2": (jax.random.normal(k4, (16,), jnp.float32) * 0.01),
    }

    x = jax.random.normal(kx, (N, Cin, H, W), jnp.float32)

    out = disp_unpack_forward(x, params, output_size=(4 * H, 4 * W))
    out = jax.block_until_ready(out)

    assert out.shape == (N, 1, 4 * H, 4 * W), out.shape

    ref = jax.block_until_ready(_reference_forward(x, params))
    # bf16 MXU operands + reduced internal precision -> loose tolerance
    # (sigmoid outputs are in (0,1); observed error is ~1e-3).
    if not jnp.allclose(out, ref, atol=3e-2, rtol=3e-2):
        raise AssertionError("Pallas DispUnpack does not match reference")

    print("KERNEL_OK")
</pallas_src>

<mosaic_0001>
module attributes {stable_mosaic.version = 11 : i64} {
  func.func @_disp_unpack_kernel(%arg0: i32, %arg1: i32, %arg2: memref<1x8x16x8xf32, #tpu.memory_space<vmem>>, %arg3: memref<1x2x16x8xf32, #tpu.memory_space<vmem>>, %arg4: memref<1x2x16x8xf32, #tpu.memory_space<vmem>>, %arg5: memref<72x32xbf16, #tpu.memory_space<vmem>>, %arg6: memref<1x32xf32, #tpu.memory_space<vmem>>, %arg7: memref<288x16xbf16, #tpu.memory_space<vmem>>, %arg8: memref<1x16xf32, #tpu.memory_space<vmem>>, %arg9: memref<1x8x16x16xf32, #tpu.memory_space<vmem>>, %arg10: memref<12x18x8xf32, #tpu.memory_space<vmem>>, %arg11: memref<10x18x32xf32, #tpu.memory_space<vmem>>) attributes {dimension_semantics = [#tpu.dimension_semantics<parallel>, #tpu.dimension_semantics<parallel>], iteration_bounds = array<i64: 2, 2>, scalar_prefetch = 0 : i64, scratch_operands = 2 : i64, tpu.core_type = #tpu.core_type<tc>, window_params = [{transform_indices = @transform_0, window_bounds = array<i64: 1, 8, 16, 8>}, {transform_indices = @transform_1, window_bounds = array<i64: 1, 2, 16, 8>}, {transform_indices = @transform_2, window_bounds = array<i64: 1, 2, 16, 8>}, {pipeline_mode = #tpu.pipeline_mode<synchronous>, transform_indices = @transform_3, window_bounds = array<i64: 72, 32>}, {pipeline_mode = #tpu.pipeline_mode<synchronous>, transform_indices = @transform_4, window_bounds = array<i64: 1, 32>}, {pipeline_mode = #tpu.pipeline_mode<synchronous>, transform_indices = @transform_5, window_bounds = array<i64: 288, 16>}, {pipeline_mode = #tpu.pipeline_mode<synchronous>, transform_indices = @transform_6, window_bounds = array<i64: 1, 16>}, {transform_indices = @transform_7, window_bounds = array<i64: 1, 8, 16, 16>}]} {
    %c0_i32 = arith.constant 0 : i32
    %0 = arith.cmpi sgt, %arg1, %c0_i32 : i32
    %cst = arith.constant 1.000000e+00 : f32
    %cst_0 = arith.constant 0.000000e+00 : f32
    %1 = arith.select %0, %cst, %cst_0 : f32
    %c1_i32 = arith.constant 1 : i32
    %2 = arith.cmpi slt, %arg1, %c1_i32 : i32
    %cst_1 = arith.constant 1.000000e+00 : f32
    %cst_2 = arith.constant 0.000000e+00 : f32
    %3 = arith.select %2, %cst_1, %cst_2 : f32
    %cst_3 = arith.constant 0.000000e+00 : f32
    %4 = vector.broadcast %cst_3 : f32 to vector<12x1x8xf32>
    %c0 = arith.constant 0 : index
    %c0_4 = arith.constant 0 : index
    %c0_5 = arith.constant 0 : index
    %5 = vector.load %arg10[%c0, %c0_4, %c0_5] : memref<12x18x8xf32, #tpu.memory_space<vmem>>, vector<12x1x8xf32>
    tpu.vector_store %arg10[%c0, %c0_4, %c0_5], %4 {strides = array<i32>} : memref<12x18x8xf32, #tpu.memory_space<vmem>>, vector<12x1x8xf32>,
    %cst_6 = arith.constant 0.000000e+00 : f32
    %6 = vector.broadcast %cst_6 : f32 to vector<12x1x8xf32>
    %c0_7 = arith.constant 0 : index
    %c17 = arith.constant 17 : index
    %c0_8 = arith.constant 0 : index
    %7 = vector.load %arg10[%c0_7, %c17, %c0_8] : memref<12x18x8xf32, #tpu.memory_space<vmem>>, vector<12x1x8xf32>
    tpu.vector_store %arg10[%c0_7, %c17, %c0_8], %6 {strides = array<i32>} : memref<12x18x8xf32, #tpu.memory_space<vmem>>, vector<12x1x8xf32>,
    %c0_9 = arith.constant 0 : index
    %c0_10 = arith.constant 0 : index
    %c0_11 = arith.constant 0 : index
    %c0_12 = arith.constant 0 : index
    %8 = vector.load %arg3[%c0_9, %c0_10, %c0_11, %c0_12] : memref<1x2x16x8xf32, #tpu.memory_space<vmem>>, vector<1x2x16x8xf32>
    %9 = vector.shape_cast %8 : vector<1x2x16x8xf32> to vector<2x16x8xf32>
    %10 = vector.broadcast %1 : f32 to vector<2x16x8xf32>
    %11 = arith.mulf %9, %10 : vector<2x16x8xf32>
    %c0_13 = arith.constant 0 : index
    %c1 = arith.constant 1 : index
    %c0_14 = arith.constant 0 : index
    %12 = vector.load %arg10[%c0_13, %c1, %c0_14] : memref<12x18x8xf32, #tpu.memory_space<vmem>>, vector<2x16x8xf32>
    tpu.vector_store %arg10[%c0_13, %c1, %c0_14], %11 {strides = array<i32>} : memref<12x18x8xf32, #tpu.memory_space<vmem>>, vector<2x16x8xf32>,
    %c0_15 = arith.constant 0 : index
    %c0_16 = arith.constant 0 : index
    %c0_17 = arith.constant 0 : index
    %c0_18 = arith.constant 0 : index
    %13 = vector.load %arg4[%c0_15, %c0_16, %c0_17, %c0_18] : memref<1x2x16x8xf32, #tpu.memory_space<vmem>>, vector<1x2x16x8xf32>
    %14 = vector.shape_cast %13 : vector<1x2x16x8xf32> to vector<2x16x8xf32>
    %15 = vector.broadcast %3 : f32 to vector<2x16x8xf32>
    %16 = arith.mulf %14, %15 : vector<2x16x8xf32>
    %c10 = arith.constant 10 : index
    %c1_19 = arith.constant 1 : index
    %c0_20 = arith.constant 0 : index
    %17 = vector.load %arg10[%c10, %c1_19, %c0_20] : memref<12x18x8xf32, #tpu.memory_space<vmem>>, vector<2x16x8xf32>
    tpu.vector_store %arg10[%c10, %c1_19, %c0_20], %16 {strides = array<i32>} : memref<12x18x8xf32, #tpu.memory_space<vmem>>, vector<2x16x8xf32>,
    %c0_21 = arith.constant 0 : index
    %c0_22 = arith.constant 0 : index
    %c0_23 = arith.constant 0 : index
    %c0_24 = arith.constant 0 : index
    %18 = vector.load %arg2[%c0_21, %c0_22, %c0_23, %c0_24] : memref<1x8x16x8xf32, #tpu.memory_space<vmem>>, vector<1x8x16x8xf32>
    %19 = vector.shape_cast %18 : vector<1x8x16x8xf32> to vector<8x16x8xf32>
    %c2 = arith.constant 2 : index
    %c1_25 = arith.constant 1 : index
    %c0_26 = arith.constant 0 : index
    %20 = vector.load %arg10[%c2, %c1_25, %c0_26] : memref<12x18x8xf32, #tpu.memory_space<vmem>>, vector<8x16x8xf32>
    tpu.vector_store %arg10[%c2, %c1_25, %c0_26], %19 {strides = array<i32>} : memref<12x18x8xf32, #tpu.memory_space<vmem>>, vector<8x16x8xf32>,
    %c0_27 = arith.constant 0 : index
    %c0_28 = arith.constant 0 : index
    %c0_29 = arith.constant 0 : index
    %21 = vector.load %arg10[%c0_27, %c0_28, %c0_29] : memref<12x18x8xf32, #tpu.memory_space<vmem>>, vector<10x16x8xf32>
    %22 = vector.shape_cast %21 : vector<10x16x8xf32> to vector<160x8xf32>
    %c0_30 = arith.constant 0 : index
    %c1_31 = arith.constant 1 : index
    %c0_32 = arith.constant 0 : index
    %23 = vector.load %arg10[%c0_30, %c1_31, %c0_32] : memref<12x18x8xf32, #tpu.memory_space<vmem>>, vector<10x16x8xf32>
    %24 = vector.shape_cast %23 : vector<10x16x8xf32> to vector<160x8xf32>
    %c0_33 = arith.constant 0 : index
    %c2_34 = arith.constant 2 : index
    %c0_35 = arith.constant 0 : index
    %25 = vector.load %arg10[%c0_33, %c2_34, %c0_35] : memref<12x18x8xf32, #tpu.memory_space<vmem>>, vector<10x16x8xf32>
    %26 = vector.shape_cast %25 : vector<10x16x8xf32> to vector<160x8xf32>
    %c1_36 = arith.constant 1 : index
    %c0_37 = arith.constant 0 : index
    %c0_38 = arith.constant 0 : index
    %27 = vector.load %arg10[%c1_36, %c0_37, %c0_38] : memref<12x18x8xf32, #tpu.memory_space<vmem>>, vector<10x16x8xf32>
    %28 = vector.shape_cast %27 : vector<10x16x8xf32> to vector<160x8xf32>
    %c1_39 = arith.constant 1 : index
    %c1_40 = arith.constant 1 : index
    %c0_41 = arith.constant 0 : index
    %29 = vector.load %arg10[%c1_39, %c1_40, %c0_41] : memref<12x18x8xf32, #tpu.memory_space<vmem>>, vector<10x16x8xf32>
    %30 = vector.shape_cast %29 : vector<10x16x8xf32> to vector<160x8xf32>
    %c1_42 = arith.constant 1 : index
    %c2_43 = arith.constant 2 : index
    %c0_44 = arith.constant 0 : index
    %31 = vector.load %arg10[%c1_42, %c2_43, %c0_44] : memref<12x18x8xf32, #tpu.memory_space<vmem>>, vector<10x16x8xf32>
    %32 = vector.shape_cast %31 : vector<10x16x8xf32> to vector<160x8xf32>
    %c2_45 = arith.constant 2 : index
    %c0_46 = arith.constant 0 : index
    %c0_47 = arith.constant 0 : index
    %33 = vector.load %arg10[%c2_45, %c0_46, %c0_47] : memref<12x18x8xf32, #tpu.memory_space<vmem>>, vector<10x16x8xf32>
    %34 = vector.shape_cast %33 : vector<10x16x8xf32> to vector<160x8xf32>
    %c2_48 = arith.constant 2 : index
    %c1_49 = arith.constant 1 : index
    %c0_50 = arith.constant 0 : index
    %35 = vector.load %arg10[%c2_48, %c1_49, %c0_50] : memref<12x18x8xf32, #tpu.memory_space<vmem>>, vector<10x16x8xf32>
    %36 = vector.shape_cast %35 : vector<10x16x8xf32> to vector<160x8xf32>
    %c2_51 = arith.constant 2 : index
    %c2_52 = arith.constant 2 : index
    %c0_53 = arith.constant 0 : index
    %37 = vector.load %arg10[%c2_51, %c2_52, %c0_53] : memref<12x18x8xf32, #tpu.memory_space<vmem>>, vector<10x16x8xf32>
    %38 = vector.shape_cast %37 : vector<10x16x8xf32> to vector<160x8xf32>
    %39 = tpu.concatenate %22, %24, %26, %28, %30, %32, %34, %36, %38 in 1 : vector<160x8xf32>, vector<160x8xf32>, vector<160x8xf32>, vector<160x8xf32>, vector<160x8xf32>, vector<160x8xf32>, vector<160x8xf32>, vector<160x8xf32>, vector<160x8xf32> -> vector<160x72xf32>
    %40 = arith.truncf %39 : vector<160x72xf32> to vector<160x72xbf16>
    %c0_54 = arith.constant 0 : index
    %c0_55 = arith.constant 0 : index
    %41 = vector.load %arg5[%c0_54, %c0_55] : memref<72x32xbf16, #tpu.memory_space<vmem>>, vector<72x32xbf16>
    %cst_56 = arith.constant dense<0.000000e+00> : vector<160x32xf32>
    %42 = tpu.matmul %40, %41, %cst_56 {dimension_numbers = #tpu.dot_dimension_numbers<[1], [0], [0], [1], [0, 0, 1, 1], [], []>} : vector<160x72xbf16>, vector<72x32xbf16>, vector<160x32xf32> -> vector<160x32xf32>
    %c0_57 = arith.constant 0 : index
    %c0_58 = arith.constant 0 : index
    %43 = vector.load %arg6[%c0_57, %c0_58] : memref<1x32xf32, #tpu.memory_space<vmem>>, vector<1x32xf32>
    %44 = vector.broadcast %43 : vector<1x32xf32> to vector<160x32xf32>
    %45 = arith.addf %42, %44 : vector<160x32xf32>
    %cst_59 = arith.constant 0.000000e+00 : f32
    %46 = vector.broadcast %cst_59 : f32 to vector<160x32xf32>
    %47 = arith.maximumf %45, %46 : vector<160x32xf32>
    %48 = vector.shape_cast %47 : vector<160x32xf32> to vector<10x16x32xf32>
    %cst_60 = arith.constant 0.000000e+00 : f32
    %49 = vector.broadcast %cst_60 : f32 to vector<10x1x32xf32>
    %c0_61 = arith.constant 0 : index
    %c0_62 = arith.constant 0 : index
    %c0_63 = arith.constant 0 : index
    %50 = vector.load %arg11[%c0_61, %c0_62, %c0_63] : memref<10x18x32xf32, #tpu.memory_space<vmem>>, vector<10x1x32xf32>
    tpu.vector_store %arg11[%c0_61, %c0_62, %c0_63], %49 {strides = array<i32>} : memref<10x18x32xf32, #tpu.memory_space<vmem>>, vector<10x1x32xf32>,
    %cst_64 = arith.constant 0.000000e+00 : f32
    %51 = vector.broadcast %cst_64 : f32 to vector<10x1x32xf32>
    %c0_65 = arith.constant 0 : index
    %c17_66 = arith.constant 17 : index
    %c0_67 = arith.constant 0 : index
    %52 = vector.load %arg11[%c0_65, %c17_66, %c0_67] : memref<10x18x32xf32, #tpu.memory_space<vmem>>, vector<10x1x32xf32>
    tpu.vector_store %arg11[%c0_65, %c17_66, %c0_67], %51 {strides = array<i32>} : memref<10x18x32xf32, #tpu.memory_space<vmem>>, vector<10x1x32xf32>,
    %53 = vector.extract_strided_slice %48 {offsets = [0, 0, 0], sizes = [1, 16, 32], strides = [1, 1, 1]} : vector<10x16x32xf32> to vector<1x16x32xf32>
    %54 = vector.broadcast %1 : f32 to vector<1x16x32xf32>
    %55 = arith.mulf %53, %54 : vector<1x16x32xf32>
    %c0_68 = arith.constant 0 : index
    %c1_69 = arith.constant 1 : index
    %c0_70 = arith.constant 0 : index
    %56 = vector.load %arg11[%c0_68, %c1_69, %c0_70] : memref<10x18x32xf32, #tpu.memory_space<vmem>>, vector<1x16x32xf32>
    tpu.vector_store %arg11[%c0_68, %c1_69, %c0_70], %55 {strides = array<i32>} : memref<10x18x32xf32, #tpu.memory_space<vmem>>, vector<1x16x32xf32>,
    %57 = vector.extract_strided_slice %48 {offsets = [9, 0, 0], sizes = [1, 16, 32], strides = [1, 1, 1]} : vector<10x16x32xf32> to vector<1x16x32xf32>
    %58 = vector.broadcast %3 : f32 to vector<1x16x32xf32>
    %59 = arith.mulf %57, %58 : vector<1x16x32xf32>
    %c9 = arith.constant 9 : index
    %c1_71 = arith.constant 1 : index
    %c0_72 = arith.constant 0 : index
    %60 = vector.load %arg11[%c9, %c1_71, %c0_72] : memref<10x18x32xf32, #tpu.memory_space<vmem>>, vector<1x16x32xf32>
    tpu.vector_store %arg11[%c9, %c1_71, %c0_72], %59 {strides = array<i32>} : memref<10x18x32xf32, #tpu.memory_space<vmem>>, vector<1x16x32xf32>,
    %61 = vector.extract_strided_slice %48 {offsets = [1, 0, 0], sizes = [8, 16, 32], strides = [1, 1, 1]} : vector<10x16x32xf32> to vector<8x16x32xf32>
    %c1_73 = arith.constant 1 : index
    %c1_74 = arith.constant 1 : index
    %c0_75 = arith.constant 0 : index
    %62 = vector.load %arg11[%c1_73, %c1_74, %c0_75] : memref<10x18x32xf32, #tpu.memory_space<vmem>>, vector<8x16x32xf32>
    tpu.vector_store %arg11[%c1_73, %c1_74, %c0_75], %61 {strides = array<i32>} : memref<10x18x32xf32, #tpu.memory_space<vmem>>, vector<8x16x32xf32>,
    %c0_76 = arith.constant 0 : index
    %c0_77 = arith.constant 0 : index
    %c0_78 = arith.constant 0 : index
    %63 = vector.load %arg11[%c0_76, %c0_77, %c0_78] : memref<10x18x32xf32, #tpu.memory_space<vmem>>, vector<8x16x32xf32>
    %64 = vector.shape_cast %63 : vector<8x16x32xf32> to vector<128x32xf32>
    %c0_79 = arith.constant 0 : index
    %c1_80 = arith.constant 1 : index
    %c0_81 = arith.constant 0 : index
    %65 = vector.load %arg11[%c0_79, %c1_80, %c0_81] : memref<10x18x32xf32, #tpu.memory_space<vmem>>, vector<8x16x32xf32>
    %66 = vector.shape_cast %65 : vector<8x16x32xf32> to vector<128x32xf32>
    %c0_82 = arith.constant 0 : index
    %c2_83 = arith.constant 2 : index
    %c0_84 = arith.constant 0 : index
    %67 = vector.load %arg11[%c0_82, %c2_83, %c0_84] : memref<10x18x32xf32, #tpu.memory_space<vmem>>, vector<8x16x32xf32>
    %68 = vector.shape_cast %67 : vector<8x16x32xf32> to vector<128x32xf32>
    %c1_85 = arith.constant 1 : index
    %c0_86 = arith.constant 0 : index
    %c0_87 = arith.constant 0 : index
    %69 = vector.load %arg11[%c1_85, %c0_86, %c0_87] : memref<10x18x32xf32, #tpu.memory_space<vmem>>, vector<8x16x32xf32>
    %70 = vector.shape_cast %69 : vector<8x16x32xf32> to vector<128x32xf32>
    %c1_88 = arith.constant 1 : index
    %c1_89 = arith.constant 1 : index
    %c0_90 = arith.constant 0 : index
    %71 = vector.load %arg11[%c1_88, %c1_89, %c0_90] : memref<10x18x32xf32, #tpu.memory_space<vmem>>, vector<8x16x32xf32>
    %72 = vector.shape_cast %71 : vector<8x16x32xf32> to vector<128x32xf32>
    %c1_91 = arith.constant 1 : index
    %c2_92 = arith.constant 2 : index
    %c0_93 = arith.constant 0 : index
    %73 = vector.load %arg11[%c1_91, %c2_92, %c0_93] : memref<10x18x32xf32, #tpu.memory_space<vmem>>, vector<8x16x32xf32>
    %74 = vector.shape_cast %73 : vector<8x16x32xf32> to vector<128x32xf32>
    %c2_94 = arith.constant 2 : index
    %c0_95 = arith.constant 0 : index
    %c0_96 = arith.constant 0 : index
    %75 = vector.load %arg11[%c2_94, %c0_95, %c0_96] : memref<10x18x32xf32, #tpu.memory_space<vmem>>, vector<8x16x32xf32>
    %76 = vector.shape_cast %75 : vector<8x16x32xf32> to vector<128x32xf32>
    %c2_97 = arith.constant 2 : index
    %c1_98 = arith.constant 1 : index
    %c0_99 = arith.constant 0 : index
    %77 = vector.load %arg11[%c2_97, %c1_98, %c0_99] : memref<10x18x32xf32, #tpu.memory_space<vmem>>, vector<8x16x32xf32>
    %78 = vector.shape_cast %77 : vector<8x16x32xf32> to vector<128x32xf32>
    %c2_100 = arith.constant 2 : index
    %c2_101 = arith.constant 2 : index
    %c0_102 = arith.constant 0 : index
    %79 = vector.load %arg11[%c2_100, %c2_101, %c0_102] : memref<10x18x32xf32, #tpu.memory_space<vmem>>, vector<8x16x32xf32>
    %80 = vector.shape_cast %79 : vector<8x16x32xf32> to vector<128x32xf32>
    %81 = tpu.concatenate %64, %66, %68, %70, %72, %74, %76, %78, %80 in 1 : vector<128x32xf32>, vector<128x32xf32>, vector<128x32xf32>, vector<128x32xf32>, vector<128x32xf32>, vector<128x32xf32>, vector<128x32xf32>, vector<128x32xf32>, vector<128x32xf32> -> vector<128x288xf32>
    %82 = arith.truncf %81 : vector<128x288xf32> to vector<128x288xbf16>
    %c0_103 = arith.constant 0 : index
    %c0_104 = arith.constant 0 : index
    %83 = vector.load %arg7[%c0_103, %c0_104] : memref<288x16xbf16, #tpu.memory_space<vmem>>, vector<288x16xbf16>
    %cst_105 = arith.constant dense<0.000000e+00> : vector<128x16xf32>
    %84 = tpu.matmul %82, %83, %cst_105 {dimension_numbers = #tpu.dot_dimension_numbers<[1], [0], [0], [1], [0, 0, 1, 1], [], []>} : vector<128x288xbf16>, vector<288x16xbf16>, vector<128x16xf32> -> vector<128x16xf32>
    %c0_106 = arith.constant 0 : index
    %c0_107 = arith.constant 0 : index
    %85 = vector.load %arg8[%c0_106, %c0_107] : memref<1x16xf32, #tpu.memory_space<vmem>>, vector<1x16xf32>
    %86 = vector.broadcast %85 : vector<1x16xf32> to vector<128x16xf32>
    %87 = arith.addf %84, %86 : vector<128x16xf32>
    %88 = arith.negf %87 : vector<128x16xf32>
    %89 = math.exp %88 : vector<128x16xf32>
    %cst_108 = arith.constant 1.000000e+00 : f32
    %90 = vector.broadcast %cst_108 : f32 to vector<128x16xf32>
    %91 = arith.addf %90, %89 : vector<128x16xf32>
    %92 = arith.divf %90, %91 : vector<128x16xf32>
    %93 = vector.shape_cast %92 : vector<128x16xf32> to vector<1x8x16x16xf32>
    %c0_109 = arith.constant 0 : index
    %c0_110 = arith.constant 0 : index
    %c0_111 = arith.constant 0 : index
    %c0_112 = arith.constant 0 : index
    %94 = vector.load %arg9[%c0_109, %c0_110, %c0_111, %c0_112] : memref<1x8x16x16xf32, #tpu.memory_space<vmem>>, vector<1x8x16x16xf32>
    tpu.vector_store %arg9[%c0_109, %c0_110, %c0_111, %c0_112], %93 {strides = array<i32>} : memref<1x8x16x16xf32, #tpu.memory_space<vmem>>, vector<1x8x16x16xf32>,
    return
  }
  func.func @transform_0(%arg0: i32, %arg1: i32) -> (i32, i32, i32, i32) {
    %c0_i32 = arith.constant 0 : i32
    %c0_i32_0 = arith.constant 0 : i32
    %c0_i32_1 = arith.constant 0 : i32
    return %arg0, %arg1, %c0_i32, %c0_i32_0 : i32, i32, i32, i32
  }
  func.func @transform_1(%arg0: i32, %arg1: i32) -> (i32, i32, i32, i32) {
    %c4_i32 = arith.constant 4 : i32
    %0 = arith.muli %arg1, %c4_i32 : i32
    %c1_i32 = arith.constant 1 : i32
    %1 = arith.subi %0, %c1_i32 : i32
    %c0_i32 = arith.constant 0 : i32
    %2 = arith.maxsi %1, %c0_i32 : i32
    %c0_i32_0 = arith.constant 0 : i32
    %c0_i32_1 = arith.constant 0 : i32
    %c0_i32_2 = arith.constant 0 : i32
    return %arg0, %2, %c0_i32_0, %c0_i32_1 : i32, i32, i32, i32
  }
  func.func @transform_2(%arg0: i32, %arg1: i32) -> (i32, i32, i32, i32) {
    %c1_i32 = arith.constant 1 : i32
    %0 = arith.addi %arg1, %c1_i32 : i32
    %c4_i32 = arith.constant 4 : i32
    %1 = arith.muli %0, %c4_i32 : i32
    %c7_i32 = arith.constant 7 : i32
    %2 = arith.minsi %1, %c7_i32 : i32
    %c0_i32 = arith.constant 0 : i32
    %c0_i32_0 = arith.constant 0 : i32
    %c0_i32_1 = arith.constant 0 : i32
    return %arg0, %2, %c0_i32, %c0_i32_0 : i32, i32, i32, i32
  }
  func.func @transform_3(%arg0: i32, %arg1: i32) -> (i32, i32) {
    %c0_i32 = arith.constant 0 : i32
    %c0_i32_0 = arith.constant 0 : i32
    %c0_i32_1 = arith.constant 0 : i32
    return %c0_i32, %c0_i32_0 : i32, i32
  }
  func.func @transform_4(%arg0: i32, %arg1: i32) -> (i32, i32) {
    %c0_i32 = arith.constant 0 : i32
    %c0_i32_0 = arith.constant 0 : i32
    %c0_i32_1 = arith.constant 0 : i32
    return %c0_i32, %c0_i32_0 : i32, i32
  }
  func.func @transform_5(%arg0: i32, %arg1: i32) -> (i32, i32) {
    %c0_i32 = arith.constant 0 : i32
    %c0_i32_0 = arith.constant 0 : i32
    %c0_i32_1 = arith.constant 0 : i32
    return %c0_i32, %c0_i32_0 : i32, i32
  }
  func.func @transform_6(%arg0: i32, %arg1: i32) -> (i32, i32) {
    %c0_i32 = arith.constant 0 : i32
    %c0_i32_0 = arith.constant 0 : i32
    %c0_i32_1 = arith.constant 0 : i32
    return %c0_i32, %c0_i32_0 : i32, i32
  }
  func.func @transform_7(%arg0: i32, %arg1: i32) -> (i32, i32, i32, i32) {
    %c0_i32 = arith.constant 0 : i32
    %c0_i32_0 = arith.constant 0 : i32
    %c0_i32_1 = arith.constant 0 : i32
    return %arg0, %arg1, %c0_i32, %c0_i32_0 : i32, i32, i32, i32
  }
}

</mosaic_0001>

<bundles_post_ra>
// kernel: tpu_custom_call.1
= control target key start
LH: loop header
LB: loop body
LE: loop exit
PB: predicated region body
PF: predicated region fallthrough
CT: control target
= control target key end

     0   :  { %s5539_s0 = inlined_call_operand.vmem [shape: f32[2,16,16,8], index: 0, kind: input, shape index: {}]   ;;  %s5540_s1 = inlined_call_operand.vmem [shape: f32[2,16,16,8], index: 1, kind: input, shape index: {}]   ;;  %s5541_s2 = inlined_call_operand.vmem [shape: f32[2,16,16,8], index: 2, kind: input, shape index: {}]   ;;  %s5542_s3 = inlined_call_operand.vmem [shape: bf16[72,32], index: 3, kind: input, shape index: {}]   ;;  %s5543_s4 = inlined_call_operand.vmem [shape: f32[1,32], index: 4, kind: input, shape index: {}]   ;;  %s5544_s5 = inlined_call_operand.vmem [shape: bf16[288,16], index: 5, kind: input, shape index: {}]   ;;  %s5545_s6 = inlined_call_operand.vmem [shape: f32[1,16], index: 6, kind: input, shape index: {}]   ;;  %s5546_s7 = inlined_call_operand.hbm [shape: f32[2,16,16,16], index: 7, kind: output, shape index: {}]  }
   0x1   :  { %5554 = sst [smem:[#allocation8_spill]] %s5539_s0 }
   0x2   :  { %12 = vsyncpa [#allocation5], 0 }
   0x3   :  { %14 = vsyncpa [#allocation5 + $0x1], 0  ;;  %s4264_s24 = smov 0   ;;  %s4266_s25 = smov 0  }
   0x4   :  { %s4268_s26 = smov 0   ;;  %s4270_s27 = smov 0  }
   0x5   :  { %s4272_s28 = smov 0   ;;  %s4274_s29 = smov 0  }
   0x6   :  { %s4276_s30 = smov 0   ;;  %s4278_s8 = smov 0  }
   0x7 LB: > { %s3067_s9 = sadd.s32 4294967295, %s4210_s8   ;;  %s3068_s10 = sadd.s32 4294967294, %s4210_s8   ;;  %s4210_s8 = sphi %s4278_s8, %s20_s8   ;;  %s4206_s30 = sphi %s4276_s30, %s5570_s30   ;;  %s4202_s29 = sphi %s4274_s29, %s5569_s29   ;;  %s4198_s28 = sphi %s4272_s28, %s5568_s28   ;;  %s4194_s27 = sphi %s4270_s27, %s5567_s27   ;;  %s4190_s26 = sphi %s4268_s26, %s5566_s26   ;;  %s4186_s25 = sphi %s4266_s25, %s5565_s25   ;;  %s4182_s24 = sphi %s4264_s24, %s5564_s24  }
   0x8   : > { %s29_s11 = sadd.s32 1, %s4202_s29  ;;  %s32_s12 = sadd.s32 1, %s4206_s30 }
   0x9   : > { %p30_p0 = scmp.ge.s32.totalorder %s29_s11, 2  ;;  %p235_p1 = scmp.ne.s32.totalorder %s4190_s26, %s4186_s25 }
   0xa   : > { %p236_p2 = scmp.eq.s32.totalorder %s3067_s9, 3  ;;  %p241_p5 = scmp.ne.s32.totalorder %s4186_s25, %s4182_s24 }
   0xb   : > { %s5572_s11 = smov (%p30_p0, %s29_s11), 0  ;;  %s5574_s12 = smov (!%p30_p0, %s32_s12), %s4206_s30 }
   0xc   : > { %s221_s13 = ssub.s32 %s4202_s29, %s5572_s11  ;;  %p4315_p3 = por %p236_p2, %p235_p1 }
   0xd   : > { %p34_p4 = scmp.ge.s32.totalorder %s5574_s12, 2  ;;  %p242_p6 = scmp.eq.s32.totalorder %s3068_s10, 3 }
   0xe   : > { %p3077_p7 = scmp.ge.s32.totalorder %s4210_s8, 1  ;;  %p330_p9 = scmp.lt.s32.totalorder %s4210_s8, 5 }
   0xf   : > { %s5576_s12 = smov (%p34_p4, %s5574_s12), 0  ;;  %p4324_p8 = por %p242_p6, %p241_p5 }
  0x10   : > { %5556 = sst [smem:[#allocation7_spill]] %s5576_s12  ;;  %s220_s16 = ssub.s32 %s4206_s30, %s5576_s12 }
  0x11   : > { %s225_s17 = sadd.s32 1, %s4190_s26  ;;  %s222_s18 = sor.u32 %s221_s13, %s220_s16 }
  0x12   : > { %p331_p10 = pnand %p3077_p7, %p330_p9  ;;  %p223_p11 = scmp.eq.s32.totalorder %s222_s18, 0 }
  0x13   : > { %s3079_s20 = sshll.u32 (!%p331_p10), %s4194_s27, 3  ;;  %p396_p12 = scmp.lt.s32.totalorder (!%p331_p10), %s4198_s28, 1  ;;  %vm450_vm0 = vcmask (!%p331_p10), 57344   ;;  %v4212_v0 = vmov (!%p331_p10), 0.0   ;;  %vm484_vm1 = vcmask (!%p331_p10), 64512   ;;  %v4029_v55 = vld [vmem:[%s5542_s3] sm:$0xff] (!%p331_p10)  }
  0x14   : > { %s4333_s19 = scalar_select %p223_p11, %s4190_s26, %s225_s17  }
  0x15   : > { %334 = sbr.rel (%p331_p10) target bundleno = 956 (0x3bc), region = 48  ;;  %p4339_p13 = scmp.lt.s32.totalorder (!%p331_p10), %s3079_s20, 15  ;;  %453 = vst.msk [vmem:[#allocation2 + $0x30] sm:$0x1] (!%p331_p10), %vm450_vm0, %v4212_v0  ;;  %451 = vst.msk [vmem:[#allocation2] sm:$0x1] (!%p331_p10), %vm450_vm0, %v4212_v0  ;;  %3256 = vmatprep.subr.bf16.mxu0 (!%p331_p10), %v4029_v55 }
  0x16   : > { %452 = vst.msk [vmem:[#allocation2 + $0x18] sm:$0x1] (!%p331_p10), %vm450_vm0, %v4212_v0  ;;  %454 = vst.msk [vmem:[#allocation2 + $0x48] sm:$0x1] (!%p331_p10), %vm450_vm0, %v4212_v0  ;;  %s3083_s16 = sshll.u32 (!%p331_p10), %s4194_s27, 2  ;;  %s5559_s0 = sld [smem:[#allocation8_spill]] (!%p331_p10)  ;;  %3257 = vmatpush3.bf16.msra.mxu0 (!%p331_p10), %v4029_v55 }
  0x17   : > { %455 = vst.msk [vmem:[#allocation2 + $0x60] sm:$0x1] (!%p331_p10), %vm450_vm0, %v4212_v0  ;;  %456 = vst.msk [vmem:[#allocation2 + $0x78] sm:$0x1] (!%p331_p10), %vm450_vm0, %v4212_v0  ;;  %s3084_s21 = sadd.s32 (!%p331_p10), 4294967295, %s3083_s16  ;;  %p446_p1 = scmp.gt.s32.totalorder (!%p331_p10), %s4194_s27, 0 }
  0x18   : > { %457 = vst.msk [vmem:[#allocation2 + $0x90] sm:$0x1] (!%p331_p10), %vm450_vm0, %v4212_v0  ;;  %458 = vst.msk [vmem:[#allocation2 + $0xa8] sm:$0x1] (!%p331_p10), %vm450_vm0, %v4212_v0  ;;  %p408_p0 = scmp.gt.s32.totalorder (!%p331_p10), %s3084_s21, 0  ;;  %s4214_s17 = smov (!%p331_p10), 24  }
  0x19   : > { %459 = vst.msk [vmem:[#allocation2 + $0xc0] sm:$0x1] (!%p331_p10), %vm450_vm0, %v4212_v0  ;;  %460 = vst.msk [vmem:[#allocation2 + $0xd8] sm:$0x1] (!%p331_p10), %vm450_vm0, %v4212_v0  ;;  %p448_p6 = scmp.lt.s32.totalorder (!%p331_p10), %s4194_s27, 1  ;;  %v4030_v56 = vld [vmem:[%s5542_s3 + $0x8] sm:$0xff] (!%p331_p10)  }
  0x1a   : > { %461 = vst.msk [vmem:[#allocation2 + $0xf0] sm:$0x1] (!%p331_p10), %vm450_vm0, %v4212_v0  ;;  %462 = vst.msk [vmem:[#allocation2 + $0x108] sm:$0x1] (!%p331_p10), %vm450_vm0, %v4212_v0  ;;  %3258 = vmatprep.subr.bf16.mxu0 (!%p331_p10), %v4030_v56  ;;  %vm1608_vm2 = vcmask (!%p331_p10), 1043456   ;;  %vm1377_vm3 = vcmask (!%p331_p10), 130048  }
  0x1b   : > { %463 = vst.msk [vmem:[#allocation2 + $0x11] sm:$0x1] (!%p331_p10), %vm450_vm0, %v4212_v0  ;;  %464 = vst.msk [vmem:[#allocation2 + $0x29] sm:$0x1] (!%p331_p10), %vm450_vm0, %v4212_v0  ;;  %3259 = vmatpush3.bf16.msra.mxu0 (!%p331_p10), %v4030_v56  ;;  %vm1398_vm4 = vcmask (!%p331_p10), 195584   ;;  %vm1419_vm5 = vcmask (!%p331_p10), 261120  }
  0x1c   : > { %465 = vst.msk [vmem:[#allocation2 + $0x41] sm:$0x1] %vm450_vm0, %v4212_v0  ;;  %466 = vst.msk [vmem:[#allocation2 + $0x59] sm:$0x1] %vm450_vm0, %v4212_v0  ;;  %s397_s22 = scalar_select %p396_p12, %s4198_s28, 1  ;;  %vm1440_vm6 = vcmask 326656  }
  0x1d   : > { %467 = vst.msk [vmem:[#allocation2 + $0x71] sm:$0x1] %vm450_vm0, %v4212_v0  ;;  %468 = vst.msk [vmem:[#allocation2 + $0x89] sm:$0x1] %vm450_vm0, %v4212_v0  ;;  %s5578_s20 = smov (!%p4339_p13, %s3079_s20), 15  ;;  %s5580_s21 = smov (!%p408_p0, %s3084_s21), 0 }
  0x1e   : > { %469 = vst.msk [vmem:[#allocation2 + $0xa1] sm:$0x1] %vm450_vm0, %v4212_v0  ;;  %470 = vst.msk [vmem:[#allocation2 + $0xb9] sm:$0x1] %vm450_vm0, %v4212_v0  ;;  %s4398_s23 = sshll.u32 %s397_s22, 5  ;;  %s3080_s9 = sshll.u32 %s5578_s20, 1 }
  0x1f   : > { %471 = vst.msk [vmem:[#allocation2 + $0xd1] sm:$0x1] %vm450_vm0, %v4212_v0  ;;  %472 = vst.msk [vmem:[#allocation2 + $0xe9] sm:$0x1] %vm450_vm0, %v4212_v0  ;;  %s402_s10 = sadd.s32 %s4398_s23, %s3080_s9  ;;  %s3085_s22 = sshll.u32 %s5580_s21, 1  ;;  %vm1461_vm7 = vcmask 392192  }
  0x20   : > { %473 = vst.msk [vmem:[#allocation2 + $0x101] sm:$0x1] %vm450_vm0, %v4212_v0  ;;  %474 = vst.msk [vmem:[#allocation2 + $0x119] sm:$0x1] %vm450_vm0, %v4212_v0  ;;  %s3082_s13 = sshll.u32 %s402_s10, 3  ;;  %p413_p2 = scmp.lt.s32.totalorder %s3085_s22, 15 }
  0x21   : > { %s4405_s12 = scalar_lea.vmem %s5559_s0, %s3082_s13  ;;  %s3165_s9 = sadd.s32 4, %s3083_s16  ;;  %vm1482_vm8 = vcmask 457728   ;;  %vm1503_vm9 = vcmask 523264   ;;  %vm1577_vm10 = vcmask 588800   ;;  %vm1745_vm11 = vcmask 253952  }
  0x22   : > { %v503_v1 = vld [vmem:[%s4405_s12] sm:$0xff]  ;;  %v504_v2 = vld [vmem:[%s4405_s12 + $0x8] sm:$0xff]  ;;  %v505_v3 = vld [vmem:[%s4405_s12 + $0x10] sm:$0xff]  ;;  %s4427_s20 = scalar_select %p446_p1, 1.0, 0.0  ;;  %vm2353_vm12 = vcmask 785408  }
  0x23   : > { %520 = vst.msk [vmem:[#allocation2 + $0x31] sm:$0xff] %vm484_vm1, %v503_v1  ;;  %521 = vst.msk [vmem:[#allocation2 + $0x39] sm:$0xff] %vm484_vm1, %v504_v2  ;;  %v506_v4 = vld [vmem:[%s4405_s12 + $0x18] sm:$0xff]  ;;  %v507_v5 = vld [vmem:[%s4405_s12 + $0x20] sm:$0xff]  ;;  %s5582_s22 = smov (!%p413_p2, %s3085_s22), 15  ;;  %p427_p4 = scmp.lt.s32.totalorder %s3165_s9, 7 }
  0x24   : > { %522 = vst.msk [vmem:[#allocation2 + $0x49] sm:$0xff] %vm484_vm1, %v505_v3  ;;  %v508_v6 = vld [vmem:[%s4405_s12 + $0x28] sm:$0xff]  ;;  %523 = vst.msk [vmem:[#allocation2 + $0x51] sm:$0xff] %vm484_vm1, %v506_v4  ;;  %v509_v7 = vld [vmem:[%s4405_s12 + $0x30] sm:$0xff]  ;;  %s3086_s10 = sshll.u32 %s5582_s22, 1  ;;  %s5548_s13 = smov 48   ;;  %v4460_v23 = vstv %s4427_s20 }
  0x25   : > { %524 = vst.msk [vmem:[#allocation2 + $0x61] sm:$0xff] %vm484_vm1, %v507_v5  ;;  %525 = vst.msk [vmem:[#allocation2 + $0x69] sm:$0xff] %vm484_vm1, %v508_v6  ;;  %v510_v8 = vld [vmem:[%s4405_s12 + $0x38] sm:$0xff]  ;;  %v511_v9 = vld [vmem:[%s4405_s12 + $0x40] sm:$0xff]  ;;  %s5584_s9 = smov (!%p427_p4, %s3165_s9), 7  ;;  %s4215_s20 = smov 56  }
  0x26   : > { %526 = vst.msk [vmem:[#allocation2 + $0x79] sm:$0xff] %vm484_vm1, %v509_v7  ;;  %527 = vst.msk [vmem:[#allocation2 + $0x81] sm:$0xff] %vm484_vm1, %v510_v8  ;;  %v512_v10 = vld [vmem:[%s4405_s12 + $0x48] sm:$0xff]  ;;  %v513_v11 = vld [vmem:[%s4405_s12 + $0x50] sm:$0xff]  ;;  %s5552_s22 = smov 32   ;;  %s4218_s21 = smov 8  }
  0x27   : > { %528 = vst.msk [vmem:[#allocation2 + $0x91] sm:$0xff] %vm484_vm1, %v511_v9  ;;  %v514_v12 = vld [vmem:[%s4405_s12 + $0x58] sm:$0xff]  ;;  %529 = vst.msk [vmem:[#allocation2 + $0x99] sm:$0xff] %vm484_vm1, %v512_v10  ;;  %v515_v13 = vld [vmem:[%s4405_s12 + $0x60] sm:$0xff] }
  0x28   : > { %530 = vst.msk [vmem:[#allocation2 + $0xa9] sm:$0xff] %vm484_vm1, %v513_v11  ;;  %531 = vst.msk [vmem:[#allocation2 + $0xb1] sm:$0xff] %vm484_vm1, %v514_v12  ;;  %v516_v14 = vld [vmem:[%s4405_s12 + $0x68] sm:$0xff]  ;;  %v517_v15 = vld [vmem:[%s4405_s12 + $0x70] sm:$0xff] }
  0x29   : > { %532 = vst.msk [vmem:[#allocation2 + $0xc1] sm:$0xff] %vm484_vm1, %v515_v13  ;;  %533 = vst.msk [vmem:[#allocation2 + $0xc9] sm:$0xff] %vm484_vm1, %v516_v14  ;;  %v518_v16 = vld [vmem:[%s4405_s12 + $0x78] sm:$0xff]  ;;  %s417_s12 = sadd.s32 %s3086_s10, %s4398_s23  ;;  %s3090_s10 = sshll.u32 %s5584_s9, 1  ;;  %v4031_v2 = vld [vmem:[%s5542_s3 + $0x10] sm:$0xff]  }
  0x2a   : > { %534 = vst.msk [vmem:[#allocation2 + $0xd9] sm:$0xff] %vm484_vm1, %v517_v15  ;;  %535 = vst.msk [vmem:[#allocation2 + $0xe1] sm:$0xff] %vm484_vm1, %v518_v16  ;;  %v4448_v17 = vld [vmem:[#allocation2 + $0x30] sm:$0xff]  ;;  %v4450_v18 = vld [vmem:[#allocation2 + $0x38] sm:$0xff]  ;;  %s3088_s16 = sshll.u32 %s417_s12, 3  ;;  %p432_p5 = scmp.lt.s32.totalorder %s3090_s10, 15  ;;  %3260 = vmatprep.subr.bf16.mxu0 %v4031_v2 }
  0x2b   : > { %v677_v19 = vld [vmem:[#allocation2 + $0x31] sm:$0xff]  ;;  %v3404_v20 = vpack.i.bf16 %v4450_v18, %v4448_v17  ;;  %v678_v21 = vld [vmem:[#allocation2 + $0x39] sm:$0xff]  ;;  %s419_s0 = scalar_lea.vmem %s5540_s1, %s3088_s16  ;;  %v4479_v35 = vld [vmem:[#allocation2 + $0x48] sm:$0xff]  ;;  %3261 = vmatpush3.bf16.msra.mxu0 %v4031_v2  ;;  %1757 = vst.msk [vmem:[#allocation3 + $0x29] sm:$0x1] %vm1745_vm11, %v4212_v0 }
  0x2c   : > { %v4457_v22 = vpack.i.bf16 %v678_v21, %v677_v19  ;;  %v639_v24 = vld [vmem:[#allocation2 + $0x32] sm:$0xff]  ;;  %v640_v25 = vld [vmem:[#allocation2 + $0x3a] sm:$0xff]  ;;  %v476_v27 = vld [vmem:[%s419_s0 + $0x8] sm:$0xff]  ;;  %s5586_s10 = smov (!%p432_p5, %s3090_s10), 15  ;;  %1746 = vst.msk [vmem:[#allocation3] sm:$0x1] %vm1745_vm11, %v4212_v0 }
  0x2d   : > { %3405 = vrot.lane.b32.xlu0 %v3404_v20, %s5548_s13  ;;  %3390 = vrot.lane.b32.xlu1 %v3404_v20, %s4214_s17  ;;  %v475_v26 = vld [vmem:[%s419_s0] sm:$0xff]  ;;  %v477_v28 = vld [vmem:[%s419_s0 + $0x10] sm:$0xff]  ;;  %v481_v30 = vmul.f32 %v4460_v23, %v476_v27  ;;  %v4473_v33 = vpack.i.bf16 %v640_v25, %v639_v24  ;;  %s3091_s9 = sshll.u32 %s5586_s10, 1  ;;  %v4545_v10 = vld [vmem:[#allocation2 + $0x68] sm:$0xff]  ;;  %1747 = vst.msk [vmem:[#allocation3 + $0x18] sm:$0x1] %vm1745_vm11, %v4212_v0 }
  0x2e   : > { %v480_v29 = vmul.f32 %v4460_v23, %v475_v26  ;;  %v478_v31 = vld [vmem:[%s419_s0 + $0x18] sm:$0xff]  ;;  %v482_v32 = vmul.f32 %v4460_v23, %v477_v28  ;;  %v4481_v36 = vld [vmem:[#allocation2 + $0x50] sm:$0xff]  ;;  %s5550_s0 = smov 40   ;;  %s436_s12 = sadd.s32 %s3091_s9, %s4398_s23  ;;  %v4033_v6 = vld [vmem:[%s5542_s3 + $0x20] ss:$0 sps:$4 sm:$0xff]  }
  0x2f   : > { %v483_v34 = vmul.f32 %v4460_v23, %v478_v31  ;;  %486 = vst.msk [vmem:[#allocation2 + $0x9] sm:$0xff] %vm484_vm1, %v481_v30  ;;  %v4488_v37 = vpack.i.bf16 %v4481_v36, %v4479_v35  ;;  %v679_v38 = vld [vmem:[#allocation2 + $0x49] sm:$0xff]  ;;  %v680_v39 = vld [vmem:[#allocation2 + $0x51] sm:$0xff]  ;;  %s449_s16 = scalar_select %p448_p6, 1.0, 0.0  ;;  %v4543_v9 = vld [vmem:[#allocation2 + $0x60] sm:$0xff] }
  0x30   : > { %485 = vst.msk [vmem:[#allocation2 + $0x1] sm:$0xff] %vm484_vm1, %v480_v29  ;;  %487 = vst.msk [vmem:[#allocation2 + $0x19] sm:$0xff] %vm484_vm1, %v482_v32  ;;  %v4494_v43 = vpack.i.bf16 %v680_v39, %v679_v38  ;;  %s3093_s18 = sshll.u32 %s436_s12, 3  ;;  %v4032_v5 = vld [vmem:[%s5542_s3 + $0x18] sm:$0xff]   ;;  %s5560_s23 = smov 32   ;;  %v699_v7 = vld [vmem:[#allocation2 + $0x4a] sm:$0xff]  ;;  %v3494_v13 = vpack.i.bf16 %v4545_v10, %v4543_v9 }
  0x31   : > { %3415 = vrot.lane.b32.xlu0 %v4457_v22, %s4215_s20  ;;  %3395 = vrot.lane.b32.xlu1 %v4457_v22, %s5552_s22  ;;  %488 = vst.msk [vmem:[#allocation2 + $0x21] sm:$0xff] %vm484_vm1, %v483_v34  ;;  %s438_s9 = scalar_lea.vmem %s5541_s2, %s3093_s18  ;;  %v4506_v54 = vstv %s449_s16  ;;  %s4219_s18 = smov 16   ;;  %v700_v8 = vld [vmem:[#allocation2 + $0x52] sm:$0xff]  ;;  %v1610_v12 = vsel %vm1608_vm2, %v4033_v6, 0  ;;  %v623_v14 = vld [vmem:[#allocation2 + $0x61] sm:$0xff]  ;;  %v624_v15 = vld [vmem:[#allocation2 + $0x69] sm:$0xff] }
  0x32   : > { %v489_v58 = vld [vmem:[%s438_s9] sm:$0xff]  ;;  %v490_v59 = vld [vmem:[%s438_s9 + $0x8] sm:$0xff]  ;;  %v491_v63 = vld [vmem:[%s438_s9 + $0x10] sm:$0xff]  ;;  %3262 = vmatprep.subr.bf16.mxu0 %v4032_v5  ;;  %s5561_s12 = smov 40   ;;  %v3469_v11 = vpack.i.bf16 %v700_v8, %v699_v7  ;;  %v3504_v16 = vpack.i.bf16 %v624_v15, %v623_v14  ;;  %s5562_s22 = smov 48  }
  0x33   : > { %v494_v61 = vmul.f32 %v4506_v54, %v489_v58  ;;  %v495_v62 = vmul.f32 %v4506_v54, %v490_v59  ;;  %v492_v1 = vld [vmem:[%s438_s9 + $0x18] sm:$0xff]  ;;  %v496_v3 = vmul.f32 %v4506_v54, %v491_v63  ;;  %3263 = vmatpush3.bf16.msra.mxu0 %v4032_v5  ;;  %v643_v19 = vld [vmem:[#allocation2 + $0x62] sm:$0xff]  ;;  %v644_v20 = vld [vmem:[#allocation2 + $0x6a] sm:$0xff]  ;;  %1748 = vst.msk [vmem:[#allocation3 + $0x30] sm:$0x1] %vm1745_vm11, %v4212_v0  ;;  %s4221_s9 = smov 96  }
  0x34   : > { %v497_v4 = vmul.f32 %v4506_v54, %v492_v1  ;;  %3306 = vmatprep.subr.msk.bf16.mxu0 %vm1608_vm2, %v4033_v6  ;;  %v3514_v21 = vpack.i.bf16 %v644_v20, %v643_v19  ;;  %v4559_v24 = vld [vmem:[#allocation2 + $0x80] sm:$0xff]  ;;  %v4575_v32 = vld [vmem:[#allocation2 + $0x90] sm:$0xff]  ;;  %v612_v56 = vld [vmem:[#allocation2 + $0xc8] sm:$0xff]  ;;  %1749 = vst.msk [vmem:[#allocation3 + $0x48] sm:$0x1] %vm1745_vm11, %v4212_v0 }
  0x35   : > { %3400 = vrot.lane.b32.xlu1 %v4473_v33, %s5550_s0  ;;  %499 = vst.msk [vmem:[#allocation2 + $0xf1] sm:$0xff] %vm484_vm1, %v494_v61  ;;  %500 = vst.msk [vmem:[#allocation2 + $0xf9] sm:$0xff] %vm484_vm1, %v495_v62  ;;  %v683_v26 = vld [vmem:[#allocation2 + $0x79] sm:$0xff]  ;;  %v684_v27 = vld [vmem:[#allocation2 + $0x81] sm:$0xff] }
  0x36   : > { %v557_v41 = vld [vmem:[#allocation2 + $0x9] sm:$0xff]  ;;  %501 = vst.msk [vmem:[#allocation2 + $0x109] sm:$0xff] %vm484_vm1, %v496_v3  ;;  %502 = vst.msk [vmem:[#allocation2 + $0x111] sm:$0xff] %vm484_vm1, %v497_v4  ;;  %v3534_v28 = vpack.i.bf16 %v684_v27, %v683_v26  ;;  %v703_v29 = vld [vmem:[#allocation2 + $0x7a] sm:$0xff] }
  0x37   : > { %v556_v40 = vld [vmem:[#allocation2 + $0x1] sm:$0xff]  ;;  %v558_v42 = vld [vmem:[#allocation2 + $0x19] sm:$0xff]  ;;  %v577_v47 = vld [vmem:[#allocation2 + $0xa] sm:$0xff]  ;;  %3265 = vmatpush3.bf16.msra.mxu0 %v1610_v12  ;;  %1750 = vst.msk [vmem:[#allocation3 + $0x60] sm:$0x1] %vm1745_vm11, %v4212_v0 }
  0x38   : > { %v3424_v44 = vpack.i.bf16 %v557_v41, %v556_v40  ;;  %v559_v45 = vld [vmem:[#allocation2 + $0x21] sm:$0xff]  ;;  %v4497_v49 = vld [vmem:[#allocation2 + $0x18] sm:$0xff]  ;;  %v632_v59 = vld [vmem:[#allocation2 + $0xc9] sm:$0xff]  ;;  %1751 = vst.msk [vmem:[#allocation3 + $0x78] sm:$0x1] %vm1745_vm11, %v4212_v0 }
  0x39   : > { %3410 = vrot.lane.b32.xlu1 %v4488_v37, %s5548_s13  ;;  %v576_v46 = vld [vmem:[#allocation2 + $0x2] sm:$0xff]  ;;  %v3429_v48 = vpack.i.bf16 %v559_v45, %v558_v42  ;;  %v637_v52 = vld [vmem:[#allocation2 + $0x1a] sm:$0xff]  ;;  %s4220_s13 = smov 64   ;;  %v647_v40 = vld [vmem:[#allocation2 + $0x92] sm:$0xff]  ;;  %1752 = vst.msk [vmem:[#allocation3 + $0x90] sm:$0x1] %vm1745_vm11, %v4212_v0 }
  0x3a   : > { %3425 = vrot.lane.b32.xlu0 %v3424_v44, %s4218_s21  ;;  %v4499_v50 = vld [vmem:[#allocation2 + $0x20] sm:$0xff]  ;;  %v3434_v51 = vpack.i.bf16 %v577_v47, %v576_v46  ;;  %v4589_v44 = vld [vmem:[#allocation2 + $0xb0] sm:$0xff]  ;;  %v4609_v1 = vld [vmem:[#allocation2 + $0xd8] sm:$0xff]  ;;  %1753 = vst.msk [vmem:[#allocation3 + $0xa8] sm:$0x1] %vm1745_vm11, %v4212_v0 }
  0x3b   : > { %v638_v53 = vld [vmem:[#allocation2 + $0x22] sm:$0xff]  ;;  %v3444_v57 = vpack.i.bf16 %v4499_v50, %v4497_v49  ;;  %v628_v38 = vld [vmem:[#allocation2 + $0x99] sm:$0xff]  ;;  %v688_v47 = vld [vmem:[#allocation2 + $0xb1] sm:$0xff]  ;;  %1754 = vst.msk [vmem:[#allocation3 + $0xc0] sm:$0x1] %vm1745_vm11, %v4212_v0 }
  0x3c   : > { %v3454_v60 = vpack.i.bf16 %v638_v53, %v637_v52  ;;  %v704_v30 = vld [vmem:[#allocation2 + $0x82] sm:$0xff]  ;;  %v648_v41 = vld [vmem:[#allocation2 + $0x9a] sm:$0xff]  ;;  %v708_v52 = vld [vmem:[#allocation2 + $0xb2] sm:$0xff]  ;;  %1755 = vst.msk [vmem:[#allocation3 + $0xd8] sm:$0x1] %vm1745_vm11, %v4212_v0 }
  0x3d   : > { %3420 = vrot.lane.b32.xlu1 %v4494_v43, %s4215_s20  ;;  %v3544_v31 = vpack.i.bf16 %v704_v30, %v703_v29  ;;  %v3594_v42 = vpack.i.bf16 %v648_v41, %v647_v40  ;;  %v687_v46 = vld [vmem:[#allocation2 + $0xa9] sm:$0xff]  ;;  %v611_v55 = vld [vmem:[#allocation2 + $0xc0] sm:$0xff]  ;;  %v635_v29 = vld [vmem:[#allocation2 + $0xf1] sm:$0xff]  ;;  %1756 = vst.msk [vmem:[#allocation3 + $0x11] sm:$0x1] %vm1745_vm11, %v4212_v0 }
  0x3e   : > { %3430 = vrot.lane.b32.xlu0 %v3429_v48, %s4218_s21  ;;  %v631_v58 = vld [vmem:[#allocation2 + $0xc1] sm:$0xff]  ;;  %v652_v62 = vld [vmem:[#allocation2 + $0xca] sm:$0xff]  ;;  %v691_v4 = vld [vmem:[#allocation2 + $0xd9] sm:$0xff]  ;;  %1758 = vst.msk [vmem:[#allocation3 + $0x41] sm:$0x1] %vm1745_vm11, %v4212_v0 }
  0x3f   : > { %v651_v61 = vld [vmem:[#allocation2 + $0xc2] sm:$0xff]  ;;  %v636_v30 = vld [vmem:[#allocation2 + $0xf9] sm:$0xff]  ;;  %1759 = vst.msk [vmem:[#allocation3 + $0x59] sm:$0x1] %vm1745_vm11, %v4212_v0  ;;  %1760 = vst.msk [vmem:[#allocation3 + $0x71] sm:$0x1] %vm1745_vm11, %v4212_v0 }
  0x40   : > { %v3674_v63 = vpack.i.bf16 %v652_v62, %v651_v61  ;;  %v4611_v2 = vld [vmem:[#allocation2 + $0xe0] sm:$0xff]  ;;  %1761 = vst.msk [vmem:[#allocation3 + $0x89] sm:$0x1] %vm1745_vm11, %v4212_v0  ;;  %1762 = vst.msk [vmem:[#allocation3 + $0xa1] sm:$0x1] %vm1745_vm11, %v4212_v0 }
  0x41   : > { %3435 = vrot.lane.b32.xlu1 %v3434_v51, %s4219_s18  ;;  %v707_v51 = vld [vmem:[#allocation2 + $0xaa] sm:$0xff]  ;;  %v4617_v3 = vpack.i.bf16 %v4611_v2, %v4609_v1  ;;  %v692_v5 = vld [vmem:[#allocation2 + $0xe1] sm:$0xff]  ;;  %1763 = vst.msk [vmem:[#allocation3 + $0xb9] sm:$0x1] %vm1745_vm11, %v4212_v0  ;;  %1764 = vst.msk [vmem:[#allocation3 + $0xd1] sm:$0x1] %vm1745_vm11, %v4212_v0 }
  0x42   : > { %3445 = vrot.lane.b32.xlu0 %v3444_v57, %s4214_s17  ;;  %v3624_v53 = vpack.i.bf16 %v708_v52, %v707_v51  ;;  %v3654_v57 = vpack.i.bf16 %v612_v56, %v611_v55  ;;  %v4624_v7 = vpack.i.bf16 %v692_v5, %v691_v4  ;;  %v712_v12 = vld [vmem:[#allocation2 + $0xe2] sm:$0xff]  ;;  %1765 = vst.msk [vmem:[#allocation3 + $0xe9] sm:$0x1] %vm1745_vm11, %v4212_v0 }
  0x45   : > { %3440 = vrot.lane.b32.xlu1 %v3454_v60, %s4219_s18 }
  0x46   : > { %3450 = vrot.lane.b32.xlu0 %v3429_v48, %s5560_s23  ;;  %v3614_v48 = vpack.i.bf16 %v688_v47, %v687_v46 }
  0x49   : > { %3465 = vrot.lane.b32.xlu1 %v4457_v22, %s4218_s21  ;;  %v4557_v22 = vld [vmem:[#allocation2 + $0x78] sm:$0xff] }
  0x4a   : > { %3455 = vrot.lane.b32.xlu0 %v3454_v60, %s5561_s12  ;;  %v3524_v25 = vpack.i.bf16 %v4559_v24, %v4557_v22  ;;  %v3664_v60 = vpack.i.bf16 %v632_v59, %v631_v58 }
  0x4d   : > { %3475 = vrot.lane.b32.xlu1 %v4494_v43, %s4218_s21 }
  0x4e   : > { %3460 = vrot.lane.b32.xlu0 %v4473_v33, %s4220_s13 }
  0x51   : > { %3485 = vrot.lane.b32.xlu1 %v3469_v11, %s4219_s18 }
  0x52   : > { %3470 = vrot.lane.b32.xlu0 %v3469_v11, %s4220_s13 }
  0x55   : > { %3495 = vrot.lane.b32.xlu1 %v3494_v13, %s4214_s17 }
  0x56   : > { %3480 = vrot.lane.b32.xlu0 %v4473_v33, %s4219_s18  ;;  %v4577_v33 = vld [vmem:[#allocation2 + $0x98] sm:$0xff] }
  0x57   : > { %v3574_v34 = vpack.i.bf16 %v4577_v33, %v4575_v32 }
  0x59   : > { %3505 = vrot.lane.b32.xlu1 %v3504_v16, %s5560_s23 }
  0x5a   : > { %3490 = vrot.lane.b32.xlu0 %v4488_v37, %s4214_s17  ;;  %v627_v37 = vld [vmem:[#allocation2 + $0x91] sm:$0xff] }
  0x5b   : > { %v3584_v39 = vpack.i.bf16 %v628_v38, %v627_v37 }
  0x5d   : > { %3515 = vrot.lane.b32.xlu1 %v3514_v21, %s5561_s12 }
  0x5e   : > { %3500 = vrot.lane.b32.xlu0 %v4494_v43, %s5560_s23  ;;  %v4587_v43 = vld [vmem:[#allocation2 + $0xa8] sm:$0xff] }
  0x5f   : > { %v3604_v45 = vpack.i.bf16 %v4589_v44, %v4587_v43 }
  0x61   : > { %3525 = vrot.lane.b32.xlu1 %v3524_v25, %s5562_s22 }
  0x62   : > { %3510 = vrot.lane.b32.xlu0 %v3469_v11, %s5561_s12  ;;  %v711_v11 = vld [vmem:[#allocation2 + $0xda] sm:$0xff] }
  0x63   : > { %v4633_v14 = vpack.i.bf16 %v712_v12, %v711_v11  ;;  %v675_v11 = vld [vmem:[#allocation2 + $0x108] sm:$0xff] }
  0x65   : > { %3535 = vrot.lane.b32.xlu1 %v3534_v28, %s4215_s20 }
  0x66   : > { %3520 = vrot.lane.b32.xlu0 %v3494_v13, %s5562_s22 }
  0x69   : > { %3545 = vrot.lane.b32.xlu1 %v3544_v31, %s4220_s13 }
  0x6a   : > { %3530 = vrot.lane.b32.xlu0 %v3504_v16, %s4215_s20 }
  0x6d   : > { %3555 = vrot.lane.b32.xlu1 %v3534_v28, %s4218_s21 }
  0x6e   : > { %3540 = vrot.lane.b32.xlu0 %v3514_v21, %s4220_s13 }
  0x71   : > { %3565 = vrot.lane.b32.xlu1 %v3544_v31, %s4219_s18 }
  0x72   : > { %3550 = vrot.lane.b32.xlu0 %v3504_v16, %s4218_s21 }
  0x75   : > { %3575 = vrot.lane.b32.xlu1 %v3574_v34, %s4214_s17 }
  0x76   : > { %3560 = vrot.lane.b32.xlu0 %v3514_v21, %s4219_s18  ;;  %v615_v21 = vld [vmem:[#allocation2 + $0xf0] sm:$0xff] }
  0x79   : > { %3585 = vrot.lane.b32.xlu1 %v3584_v39, %s5560_s23 }
  0x7a   : > { %3570 = vrot.lane.b32.xlu0 %v3524_v25, %s4214_s17  ;;  %v616_v25 = vld [vmem:[#allocation2 + $0xf8] sm:$0xff] }
  0x7b   : > { %v4652_v27 = vpack.i.bf16 %v616_v25, %v615_v21 }
  0x7d   : > { %3595 = vrot.lane.b32.xlu1 %v3594_v42, %s5561_s12 }
  0x7e   : > { %3580 = vrot.lane.b32.xlu0 %v3534_v28, %s5560_s23 }
  0x81   : > { %3605 = vrot.lane.b32.xlu1 %v3604_v45, %s5562_s22 }
  0x82   : > { %3590 = vrot.lane.b32.xlu0 %v3544_v31, %s5561_s12  ;;  %v536_v31 = vld [vmem:[#allocation2] sm:$0xff] }
  0x85   : > { %3615 = vrot.lane.b32.xlu1 %v3614_v48, %s4215_s20 }
  0x86   : > { %3600 = vrot.lane.b32.xlu0 %v3574_v34, %s5562_s22 }
  0x89   : > { %3625 = vrot.lane.b32.xlu1 %v3624_v53, %s4220_s13 }
  0x8a   : > { %3610 = vrot.lane.b32.xlu0 %v3584_v39, %s4215_s20 }
  0x8d   : > { %3635 = vrot.lane.b32.xlu1 %v3614_v48, %s4218_s21 }
  0x8e   : > { %3620 = vrot.lane.b32.xlu0 %v3594_v42, %s4220_s13 }
  0x91   : > { %3645 = vrot.lane.b32.xlu1 %v3624_v53, %s4219_s18 }
  0x92   : > { %3630 = vrot.lane.b32.xlu0 %v3584_v39, %s4218_s21  ;;  %v537_v39 = vld [vmem:[#allocation2 + $0x8] sm:$0xff] }
  0x95   : > { %3655 = vrot.lane.b32.xlu1 %v3654_v57, %s4214_s17 }
  0x96   : > { %3640 = vrot.lane.b32.xlu0 %v3594_v42, %s4219_s18  ;;  %v655_v42 = vld [vmem:[#allocation2 + $0xf2] sm:$0xff] }
  0x99   : > { %3665 = vrot.lane.b32.xlu1 %v3664_v60, %s5560_s23 }
  0x9a   : > { %3650 = vrot.lane.b32.xlu0 %v3604_v45, %s4214_s17  ;;  %v656_v45 = vld [vmem:[#allocation2 + $0xfa] sm:$0xff] }
  0x9b   : > { %v4661_v56 = vpack.i.bf16 %v656_v45, %v655_v42 }
  0x9d   : > { %3675 = vrot.lane.b32.xlu1 %v3674_v63, %s5561_s12 }
  0x9e   : > { %3660 = vrot.lane.b32.xlu0 %v3614_v48, %s5560_s23  ;;  %v4657_v48 = vpack.i.bf16 %v636_v30, %v635_v29  ;;  %v696_v29 = vld [vmem:[#allocation2 + $0x111] sm:$0xff] }
  0x9f   : > { %v4619_v6 = vpop.permute.xlu1 %3390  ;;  %v4626_v8 = vpop.permute.xlu0 %3405 }
  0xa0   : > { %v3392_v12 = vunpack.i.l.bf16 %v4619_v6  ;;  %v3408_v45 = vunpack.i.h.bf16 %v4626_v8 }
  0xa1   : > { %3685 = vrot.lane.b32.xlu1 %v4617_v3, %s5562_s22 }
  0xa2   : > { %3670 = vrot.lane.b32.xlu0 %v3624_v53, %s5561_s12 }
  0xa3   : > { %v4628_v13 = vpop.permute.xlu1 %3395  ;;  %v4638_v16 = vpop.permute.xlu0 %3415 }
  0xa5   : > { %3695 = vrot.lane.b32.xlu1 %v4624_v7, %s4215_s20 }
  0xa6   : > { %3680 = vrot.lane.b32.xlu0 %v3654_v57, %s5562_s22 }
  0xa7   : > { %v4635_v15 = vpop.permute.xlu1 %3400 }
  0xa9   : > { %3705 = vrot.lane.b32.xlu1 %v4633_v14, %s4220_s13 }
  0xaa   : > { %3690 = vrot.lane.b32.xlu0 %v3664_v60, %s4215_s20 }
  0xab   : > { %v4642_v19 = vpop.permute.xlu1 %3410 }
  0xac   : > { %v3426_v20 = vpop.permute.xlu0 %3425 }
  0xad   : > { %3715 = vrot.lane.b32.xlu1 %v4624_v7, %s4218_s21  ;;  %v3428_v34 = vunpack.i.h.bf16 %v3426_v20  ;;  %v3427_v37 = vunpack.i.l.bf16 %v3426_v20 }
  0xae   : > { %3700 = vrot.lane.b32.xlu0 %v3674_v63, %s4220_s13 }
  0xaf   : > { %v4647_v26 = vpop.permute.xlu1 %3420  ;;  %v1358_v52 = vsel %vm484_vm1, %v537_v39, %v3428_v34  ;;  %v1357_v53 = vsel %vm484_vm1, %v536_v31, %v3427_v37  ;;  %v3398_v39 = vunpack.i.h.bf16 %v4628_v13 }
  0xb0   : > { %v3431_v28 = vpop.permute.xlu0 %3430 }
  0xb1   : > { %3725 = vrot.lane.b32.xlu1 %v4633_v14, %s4219_s18  ;;  %v3433_v46 = vunpack.i.h.bf16 %v3431_v28  ;;  %v3432_v47 = vunpack.i.l.bf16 %v3431_v28  ;;  %v676_v28 = vld [vmem:[#allocation2 + $0x110] sm:$0xff] }
  0xb2   : > { %3710 = vrot.lane.b32.xlu0 %v3664_v60, %s4218_s21 }
  0xb3   : > { %v3436_v38 = vpop.permute.xlu1 %3435  ;;  %v1360_v61 = vsel %vm484_vm1, %v4499_v50, %v3433_v46  ;;  %v1359_v62 = vsel %vm484_vm1, %v4497_v49, %v3432_v47  ;;  %v695_v50 = vld [vmem:[#allocation2 + $0x109] sm:$0xff]  ;;  %v3407_v46 = vunpack.i.l.bf16 %v4626_v8  ;;  %v3402_v8 = vunpack.i.l.bf16 %v4635_v15 }
  0xb4   : > { %v3438_v40 = vunpack.i.h.bf16 %v3436_v38  ;;  %v3437_v41 = vunpack.i.l.bf16 %v3436_v38  ;;  %v3446_v51 = vpop.permute.xlu0 %3445  ;;  %v3774_v42 = vpack.i.bf16 %v696_v29, %v695_v50 }
  0xb5   : > { %3735 = vrot.lane.b32.xlu1 %v4652_v27, %s4214_s17  ;;  %v3448_v4 = vunpack.i.h.bf16 %v3446_v51  ;;  %v3447_v5 = vunpack.i.l.bf16 %v3446_v51 }
  0xb6   : > { %3720 = vrot.lane.b32.xlu0 %v3674_v63, %s4219_s18  ;;  %v1379_v57 = vsel %vm1377_vm3, %v1358_v52, %v3438_v40  ;;  %v1378_v58 = vsel %vm1377_vm3, %v1357_v53, %v3437_v41  ;;  %v3393_v63 = vunpack.i.h.bf16 %v4619_v6  ;;  %v3397_v40 = vunpack.i.l.bf16 %v4628_v13 }
  0xb7   : > { %v3441_v55 = vpop.permute.xlu1 %3440  ;;  %v1400_v49 = vsel %vm1398_vm4, %v1379_v57, %v3448_v4  ;;  %v1399_v30 = vsel %vm1398_vm4, %v1378_v58, %v3447_v5  ;;  %v3764_v41 = vpack.i.bf16 %v676_v28, %v675_v11  ;;  %v3418_v58 = vunpack.i.h.bf16 %v4638_v16  ;;  %v715_v11 = vld [vmem:[#allocation2 + $0x10a] sm:$0xff] }
  0xb8   : > { %v3443_v59 = vunpack.i.h.bf16 %v3441_v55  ;;  %v3442_v60 = vunpack.i.l.bf16 %v3441_v55  ;;  %v3451_v20 = vpop.permute.xlu0 %3450 }
  0xb9   : > { %3745 = vrot.lane.b32.xlu1 %v4657_v48, %s5560_s23  ;;  %v3453_v34 = vunpack.i.h.bf16 %v3451_v20  ;;  %v3452_v37 = vunpack.i.l.bf16 %v3451_v20 }
  0xba   : > { %v1381_v21 = vsel %vm1377_vm3, %v1360_v61, %v3443_v59  ;;  %v1380_v25 = vsel %vm1377_vm3, %v1359_v62, %v3442_v60  ;;  %3730 = vrot.lane.b32.xlu0 %v4617_v3, %s4214_s17  ;;  %v3417_v59 = vunpack.i.l.bf16 %v4638_v16  ;;  %v3403_v60 = vunpack.i.h.bf16 %v4635_v15  ;;  %s3166_s17 = sshll.u32 %s4194_s27, 4 }
  0xbb   : > { %v4678_v31 = vpop.permute.xlu1 %3465  ;;  %v1401_v6 = vsel %vm1398_vm4, %v1380_v25, %v3392_v12  ;;  %v1402_v38 = vsel %vm1398_vm4, %v1381_v21, %v3393_v63  ;;  %v1420_v3 = vsel %vm1419_vm5, %v1399_v30, %v3452_v37  ;;  %v1421_v51 = vsel %vm1419_vm5, %v1400_v49, %v3453_v34  ;;  %v716_v63 = vld [vmem:[#allocation2 + $0x112] sm:$0xff] }
  0xbc   : > { %v3456_v47 = vpop.permute.xlu0 %3455  ;;  %v1422_v55 = vsel %vm1419_vm5, %v1401_v6, %v3397_v40  ;;  %v1423_v13 = vsel %vm1419_vm5, %v1402_v38, %v3398_v39  ;;  %v3413_v61 = vunpack.i.h.bf16 %v4642_v19  ;;  %v3412_v62 = vunpack.i.l.bf16 %v4642_v19 }
  0xbd   : > { %3755 = vrot.lane.b32.xlu1 %v4661_v56, %s5561_s12  ;;  %v3458_v52 = vunpack.i.h.bf16 %v3456_v47  ;;  %v3457_v53 = vunpack.i.l.bf16 %v3456_v47  ;;  %v1443_v12 = vsel %vm1440_vm6, %v1422_v55, %v3402_v8  ;;  %v1444_v15 = vsel %vm1440_vm6, %v1423_v13, %v3403_v60 }
  0xbe   : > { %3740 = vrot.lane.b32.xlu0 %v4624_v7, %s5560_s23  ;;  %v3784_v29 = vpack.i.bf16 %v716_v63, %v715_v11  ;;  %v1464_v49 = vsel %vm1461_vm7, %v1443_v12, %v3412_v62  ;;  %v1465_v30 = vsel %vm1461_vm7, %v1444_v15, %v3413_v61  ;;  %v3423_v6 = vunpack.i.h.bf16 %v4647_v26 }
  0xbf   : > { %v4694_v57 = vpop.permute.xlu1 %3475  ;;  %v1441_v4 = vsel %vm1440_vm6, %v1420_v3, %v3457_v53  ;;  %v1442_v5 = vsel %vm1440_vm6, %v1421_v51, %v3458_v52  ;;  %v3422_v38 = vunpack.i.l.bf16 %v4647_v26  ;;  %v3468_v60 = vunpack.i.h.bf16 %v4678_v31 }
  0xc0   : > { %v3461_v16 = vpop.permute.xlu0 %3460  ;;  %v1462_v20 = vsel %vm1461_vm7, %v1441_v4, %v3407_v46  ;;  %v1463_v7 = vsel %vm1461_vm7, %v1442_v5, %v3408_v45  ;;  %v1486_v47 = vsel %vm1482_vm8, %v1465_v30, %v3423_v6  ;;  %v3467_v8 = vunpack.i.l.bf16 %v4678_v31 }
  0xc1   : > { %3765 = vrot.lane.b32.xlu1 %v3764_v41, %s5562_s22  ;;  %v3463_v21 = vunpack.i.h.bf16 %v3461_v16  ;;  %v3462_v25 = vunpack.i.l.bf16 %v3461_v16  ;;  %v1483_v19 = vsel %vm1482_vm8, %v1462_v20, %v3417_v59  ;;  %v1484_v28 = vsel %vm1482_vm8, %v1463_v7, %v3418_v58 }
  0xc2   : > { %3750 = vrot.lane.b32.xlu0 %v4633_v14, %s5561_s12  ;;  %v1485_v46 = vsel %vm1482_vm8, %v1464_v49, %v3422_v38  ;;  %v3478_v58 = vunpack.i.h.bf16 %v4694_v57  ;;  %v3477_v59 = vunpack.i.l.bf16 %v4694_v57  ;;  %v1361_v31 = vsel %vm484_vm1, %v4448_v17, %v3467_v8 }
  0xc3   : > { %v3486_v50 = vpop.permute.xlu1 %3485  ;;  %v1504_v34 = vsel %vm1503_vm9, %v1483_v19, %v3462_v25  ;;  %v1505_v37 = vsel %vm1503_vm9, %v1484_v28, %v3463_v21  ;;  %v1362_v21 = vsel %vm484_vm1, %v4450_v18, %v3468_v60 }
  0xc4   : > { %v3471_v39 = vpop.permute.xlu0 %3470  ;;  %v1524_v40 = vpack.c.bf16 %v1505_v37, %v1504_v34  ;;  %v3488_v61 = vunpack.i.h.bf16 %v3486_v50  ;;  %v3487_v62 = vunpack.i.l.bf16 %v3486_v50  ;;  %v1364_v15 = vsel %vm484_vm1, %v4481_v36, %v3478_v58 }
  0xc5   : > { %3775 = vrot.lane.b32.xlu1 %v3774_v42, %s4215_s20  ;;  %v3473_v41 = vunpack.i.h.bf16 %v3471_v39  ;;  %v3472_v14 = vunpack.i.l.bf16 %v3471_v39  ;;  %v1363_v57 = vsel %vm484_vm1, %v4479_v35, %v3477_v59 }
  0xc6   : > { %3266 = vmatprep.mubr.msk.bf16.mxu0 %vm1577_vm10, %v1524_v40  ;;  %3760 = vrot.lane.b32.xlu0 %v4652_v27, %s5562_s22  ;;  %v1384_v25 = vsel %vm1377_vm3, %v1363_v57, %v3487_v62  ;;  %v1385_v19 = vsel %vm1377_vm3, %v1364_v15, %v3488_v61 }
  0xc7   : > { %v3496_v45 = vpop.permute.xlu1 %3495  ;;  %v1506_v42 = vsel %vm1503_vm9, %v1485_v46, %v3472_v14  ;;  %v1507_v3 = vsel %vm1503_vm9, %v1486_v47, %v3473_v41 }
  0xc8   : > { %v3481_v26 = vpop.permute.xlu0 %3480  ;;  %v1525_v51 = vpack.c.bf16 %v1507_v3, %v1506_v42  ;;  %v3497_v11 = vunpack.i.l.bf16 %v3496_v45 }
  0xc9   : > { %3785 = vrot.lane.b32.xlu1 %v3784_v29, %s4220_s13  ;;  %v3483_v4 = vunpack.i.h.bf16 %v3481_v26  ;;  %v3482_v5 = vunpack.i.l.bf16 %v3481_v26 }
  0xca   : > { %3267 = vmatmul.mubr.msk.bf16.vlgmr.msra.gmra.mrb[0].mxu0 %vm1577_vm10, %v1525_v51  ;;  %3770 = vrot.lane.b32.xlu0 %v4657_v48, %s4215_s20  ;;  %v3498_v48 = vunpack.i.h.bf16 %v3496_v45  ;;  %v1405_v36 = vsel %vm1398_vm4, %v1384_v25, %v3497_v11  ;;  %s3156_s20 = sshll.u32 %s4198_s28, 5 }
  0xcb   : > { %v3506_v52 = vpop.permute.xlu1 %3505  ;;  %v1382_v28 = vsel %vm1377_vm3, %v1361_v31, %v3482_v5  ;;  %v1383_v50 = vsel %vm1377_vm3, %v1362_v21, %v3483_v4  ;;  %s2937_s18 = sadd.s32 %s3166_s17, %s3156_s20 }
  0xcc   : > { %v3491_v53 = vpop.permute.xlu0 %3490  ;;  %v3508_v16 = vunpack.i.h.bf16 %v3506_v52  ;;  %v3507_v12 = vunpack.i.l.bf16 %v3506_v52  ;;  %v1406_v35 = vsel %vm1398_vm4, %v1385_v19, %v3498_v48  ;;  %s3157_s0 = sshll.u32 %s2937_s18, 7 }
  0xcd   : > { %v3493_v20 = vunpack.i.h.bf16 %v3491_v53  ;;  %v3492_v7 = vunpack.i.l.bf16 %v3491_v53 }
  0xce   : > { %3780 = vrot.lane.b32.xlu0 %v4661_v56, %s4220_s13  ;;  %v1426_v49 = vsel %vm1419_vm5, %v1405_v36, %v3507_v12  ;;  %v1427_v17 = vsel %vm1419_vm5, %v1406_v35, %v3508_v16 }
  0xcf   : > { %v3516_v55 = vpop.permute.xlu1 %3515  ;;  %v1403_v37 = vsel %vm1398_vm4, %v1382_v28, %v3492_v7  ;;  %v1404_v6 = vsel %vm1398_vm4, %v1383_v50, %v3493_v20 }
  0xd0   : > { %v3501_v27 = vpop.permute.xlu0 %3500  ;;  %v3518_v30 = vunpack.i.h.bf16 %v3516_v55  ;;  %v3517_v34 = vunpack.i.l.bf16 %v3516_v55 }
  0xd1   : > { %v3503_v40 = vunpack.i.h.bf16 %v3501_v27  ;;  %v3502_v41 = vunpack.i.l.bf16 %v3501_v27 }
  0xd2   : > { %v1447_v51 = vsel %vm1440_vm6, %v1426_v49, %v3517_v34  ;;  %v1448_v52 = vsel %vm1440_vm6, %v1427_v17, %v3518_v30 }
  0xd3   : > { %v3526_v13 = vpop.permute.xlu1 %3525  ;;  %v1424_v8 = vsel %vm1419_vm5, %v1403_v37, %v3502_v41  ;;  %v1425_v61 = vsel %vm1419_vm5, %v1404_v6, %v3503_v40 }
  0xd4   : > { %v3511_v63 = vpop.permute.xlu0 %3510  ;;  %v3528_v38 = vunpack.i.h.bf16 %v3526_v13  ;;  %v3527_v39 = vunpack.i.l.bf16 %v3526_v13 }
  0xd5   : > { %v3513_v46 = vunpack.i.h.bf16 %v3511_v63  ;;  %v3512_v47 = vunpack.i.l.bf16 %v3511_v63 }
  0xd6   : > { %v1468_v59 = vsel %vm1461_vm7, %v1447_v51, %v3527_v39  ;;  %v1469_v13 = vsel %vm1461_vm7, %v1448_v52, %v3528_v38 }
  0xd7   : > { %v3536_v56 = vpop.permute.xlu1 %3535  ;;  %v1445_v5 = vsel %vm1440_vm6, %v1424_v8, %v3512_v47  ;;  %v1446_v48 = vsel %vm1440_vm6, %v1425_v61, %v3513_v46 }
  0xd8   : > { %v3521_v29 = vpop.permute.xlu0 %3520  ;;  %v3538_v14 = vunpack.i.h.bf16 %v3536_v56  ;;  %v3537_v45 = vunpack.i.l.bf16 %v3536_v56 }
  0xd9   : > { %v3523_v53 = vunpack.i.h.bf16 %v3521_v29  ;;  %v3522_v55 = vunpack.i.l.bf16 %v3521_v29 }
  0xda   : > { %v1489_v62 = vsel %vm1482_vm8, %v1468_v59, %v3537_v45  ;;  %v1490_v4 = vsel %vm1482_vm8, %v1469_v13, %v3538_v14 }
  0xdb   : > { %v3546_v18 = vpop.permute.xlu1 %3545  ;;  %v1466_v12 = vsel %vm1461_vm7, %v1445_v5, %v3522_v55  ;;  %v1467_v56 = vsel %vm1461_vm7, %v1446_v48, %v3523_v53 }
  0xdc   : > { %v3531_v42 = vpop.permute.xlu0 %3530  ;;  %v3548_v3 = vunpack.i.h.bf16 %v3546_v18  ;;  %v3547_v26 = vunpack.i.l.bf16 %v3546_v18 }
  0xdd   : > { %v3533_v60 = vunpack.i.h.bf16 %v3531_v42  ;;  %v3532_v27 = vunpack.i.l.bf16 %v3531_v42 }
  0xde   : > { %v1510_v63 = vsel %vm1503_vm9, %v1489_v62, %v3547_v26  ;;  %v1511_v16 = vsel %vm1503_vm9, %v1490_v4, %v3548_v3 }
  0xdf   : > { %v3556_v58 = vpop.permute.xlu1 %3555  ;;  %v1487_v7 = vsel %vm1482_vm8, %v1466_v12, %v3532_v27  ;;  %v1488_v31 = vsel %vm1482_vm8, %v1467_v56, %v3533_v60  ;;  %v1527_v19 = vpack.c.bf16 %v1511_v16, %v1510_v63 }
  0xe0   : > { %v3541_v11 = vpop.permute.xlu0 %3540  ;;  %v3558_v18 = vunpack.i.h.bf16 %v3556_v58  ;;  %v3557_v37 = vunpack.i.l.bf16 %v3556_v58 }
  0xe1   : > { %v3543_v15 = vunpack.i.h.bf16 %v3541_v11  ;;  %v3542_v57 = vunpack.i.l.bf16 %v3541_v11 }
  0xe2   : > { %v1368_v51 = vsel %vm484_vm1, %v4559_v24, %v3558_v18  ;;  %v1367_v52 = vsel %vm484_vm1, %v4557_v22, %v3557_v37 }
  0xe3   : > { %v3566_v20 = vpop.permute.xlu1 %3565  ;;  %v1508_v21 = vsel %vm1503_vm9, %v1487_v7, %v3542_v57  ;;  %v1509_v25 = vsel %vm1503_vm9, %v1488_v31, %v3543_v15 }
  0xe4   : > { %v1526_v28 = vpack.c.bf16 %v1509_v25, %v1508_v21  ;;  %v3551_v50 = vpop.permute.xlu0 %3550  ;;  %v3568_v39 = vunpack.i.h.bf16 %v3566_v20  ;;  %v3567_v40 = vunpack.i.l.bf16 %v3566_v20 }
  0xe5   : > { %v3553_v6 = vunpack.i.h.bf16 %v3551_v50  ;;  %v3552_v38 = vunpack.i.l.bf16 %v3551_v50 }
  0xe6   : > { %3270 = vmatprep.mubr.msk.bf16.mxu0 %vm1577_vm10, %v1526_v28  ;;  %v1388_v13 = vsel %vm1377_vm3, %v1367_v52, %v3567_v40  ;;  %v1389_v60 = vsel %vm1377_vm3, %v1368_v51, %v3568_v39 }
  0xe7   : > { %v3576_v36 = vpop.permute.xlu1 %3575  ;;  %3271 = vmatmul.mubr.msk.bf16.gmra.mrb[4].mxu0 %vm1577_vm10, %v1527_v19  ;;  %v1366_v58 = vsel %vm484_vm1, %v4545_v10, %v3553_v6  ;;  %v1365_v59 = vsel %vm484_vm1, %v4543_v9, %v3552_v38 }
  0xe8   : > { %v3561_v35 = vpop.permute.xlu0 %3560  ;;  %v3578_v45 = vunpack.i.h.bf16 %v3576_v36  ;;  %v3577_v46 = vunpack.i.l.bf16 %v3576_v36 }
  0xe9   : > { %v3563_v41 = vunpack.i.h.bf16 %v3561_v35  ;;  %v3562_v14 = vunpack.i.l.bf16 %v3561_v35 }
  0xea   : > { %v1409_v24 = vsel %vm1398_vm4, %v1388_v13, %v3577_v46  ;;  %v1410_v22 = vsel %vm1398_vm4, %v1389_v60, %v3578_v45 }
  0xeb   : > { %v3586_v29 = vpop.permute.xlu1 %3585  ;;  %v1386_v27 = vsel %vm1377_vm3, %v1365_v59, %v3562_v14  ;;  %v1387_v8 = vsel %vm1377_vm3, %v1366_v58, %v3563_v41 }
  0xec   : > { %v3571_v49 = vpop.permute.xlu0 %3570  ;;  %v3588_v42 = vunpack.i.h.bf16 %v3586_v29  ;;  %v3587_v3 = vunpack.i.l.bf16 %v3586_v29 }
  0xed   : > { %v3573_v53 = vunpack.i.h.bf16 %v3571_v49  ;;  %v3572_v55 = vunpack.i.l.bf16 %v3571_v49 }
  0xee   : > { %v1430_v62 = vsel %vm1419_vm5, %v1409_v24, %v3587_v3  ;;  %v1431_v10 = vsel %vm1419_vm5, %v1410_v22, %v3588_v42 }
  0xef   : > { %v3596_v17 = vpop.permute.xlu1 %3595  ;;  %v1407_v48 = vsel %vm1398_vm4, %v1386_v27, %v3572_v55  ;;  %v1408_v11 = vsel %vm1398_vm4, %v1387_v8, %v3573_v53 }
  0xf0   : > { %v3581_v30 = vpop.permute.xlu0 %3580  ;;  %v3598_v4 = vunpack.i.h.bf16 %v3596_v17  ;;  %v3597_v5 = vunpack.i.l.bf16 %v3596_v17 }
  0xf1   : > { %v3583_v12 = vunpack.i.h.bf16 %v3581_v30  ;;  %v3582_v56 = vunpack.i.l.bf16 %v3581_v30 }
  0xf2   : > { %v1451_v19 = vsel %vm1440_vm6, %v1430_v62, %v3597_v5  ;;  %v1452_v28 = vsel %vm1440_vm6, %v1431_v10, %v3598_v4 }
  0xf3   : > { %v3606_v34 = vpop.permute.xlu1 %3605  ;;  %v1429_v18 = vsel %vm1419_vm5, %v1408_v11, %v3583_v12 }
  0xf4   : > { %v3591_v47 = vpop.permute.xlu0 %3590  ;;  %v3608_v63 = vunpack.i.h.bf16 %v3606_v34  ;;  %v3607_v16 = vunpack.i.l.bf16 %v3606_v34  ;;  %v1428_v34 = vsel %vm1419_vm5, %v1407_v48, %v3582_v56 }
  0xf5   : > { %v3593_v20 = vunpack.i.h.bf16 %v3591_v47  ;;  %v3592_v7 = vunpack.i.l.bf16 %v3591_v47 }
  0xf6   : > { %v1472_v29 = vsel %vm1461_vm7, %v1451_v19, %v3607_v16  ;;  %v1473_v49 = vsel %vm1461_vm7, %v1452_v28, %v3608_v63 }
  0xf7   : > { %v3616_v26 = vpop.permute.xlu1 %3615  ;;  %v1449_v38 = vsel %vm1440_vm6, %v1428_v34, %v3592_v7  ;;  %v1450_v39 = vsel %vm1440_vm6, %v1429_v18, %v3593_v20 }
  0xf8   : > { %v3601_v61 = vpop.permute.xlu0 %3600  ;;  %v3618_v15 = vunpack.i.h.bf16 %v3616_v26  ;;  %v3617_v57 = vunpack.i.l.bf16 %v3616_v26 }
  0xf9   : > { %v3603_v50 = vunpack.i.h.bf16 %v3601_v61  ;;  %v3602_v36 = vunpack.i.l.bf16 %v3601_v61 }
  0xfa   : > { %v1493_v37 = vsel %vm1482_vm8, %v1472_v29, %v3617_v57  ;;  %v1494_v6 = vsel %vm1482_vm8, %v1473_v49, %v3618_v15 }
  0xfb   : > { %v3626_v9 = vpop.permute.xlu1 %3625  ;;  %v1470_v45 = vsel %vm1461_vm7, %v1449_v38, %v3602_v36  ;;  %v1471_v46 = vsel %vm1461_vm7, %v1450_v39, %v3603_v50 }
  0xfc   : > { %v3611_v31 = vpop.permute.xlu0 %3610  ;;  %v3628_v21 = vunpack.i.h.bf16 %v3626_v9  ;;  %v3627_v25 = vunpack.i.l.bf16 %v3626_v9 }
  0xfd   : > { %v3613_v17 = vunpack.i.h.bf16 %v3611_v31  ;;  %v3612_v30 = vunpack.i.l.bf16 %v3611_v31 }
  0xfe   : > { %v1514_v41 = vsel %vm1503_vm9, %v1493_v37, %v3627_v25  ;;  %v1515_v14 = vsel %vm1503_vm9, %v1494_v6, %v3628_v21 }
  0xff   : > { %v3636_v35 = vpop.permute.xlu1 %3635  ;;  %v1491_v26 = vsel %vm1482_vm8, %v1470_v45, %v3612_v30  ;;  %v1492_v51 = vsel %vm1482_vm8, %v1471_v46, %v3613_v17  ;;  %v1529_v55 = vpack.c.bf16 %v1515_v14, %v1514_v41 }
 0x100   : > { %v3621_v40 = vpop.permute.xlu0 %3620  ;;  %v3637_v61 = vunpack.i.l.bf16 %v3636_v35  ;;  %v3638_v10 = vunpack.i.h.bf16 %v3636_v35 }
 0x101   : > { %v3623_v47 = vunpack.i.h.bf16 %v3621_v40  ;;  %v3622_v42 = vunpack.i.l.bf16 %v3621_v40 }
 0x102   : > { %v1371_v57 = vsel %vm484_vm1, %v4587_v43, %v3637_v61  ;;  %v1372_v31 = vsel %vm484_vm1, %v4589_v44, %v3638_v10 }
 0x103   : > { %v3646_v3 = vpop.permute.xlu1 %3645  ;;  %v1512_v52 = vsel %vm1503_vm9, %v1491_v26, %v3622_v42  ;;  %v1513_v53 = vsel %vm1503_vm9, %v1492_v51, %v3623_v47 }
 0x104   : > { %v1528_v58 = vpack.c.bf16 %v1513_v53, %v1512_v52  ;;  %v3631_v59 = vpop.permute.xlu0 %3630  ;;  %v3647_v4 = vunpack.i.l.bf16 %v3646_v3  ;;  %v3648_v48 = vunpack.i.h.bf16 %v3646_v3 }
 0x105   : > { %v3633_v5 = vunpack.i.h.bf16 %v3631_v59  ;;  %v3632_v9 = vunpack.i.l.bf16 %v3631_v59 }
 0x106   : > { %3274 = vmatprep.mubr.msk.bf16.mxu0 %vm1577_vm10, %v1528_v58  ;;  %v1392_v21 = vsel %vm1377_vm3, %v1371_v57, %v3647_v4  ;;  %v1393_v36 = vsel %vm1377_vm3, %v1372_v31, %v3648_v48 }
 0x107   : > { %v3656_v13 = vpop.permute.xlu1 %3655  ;;  %3275 = vmatmul.mubr.msk.bf16.gmra.mrb[8].mxu0 %vm1577_vm10, %v1529_v55  ;;  %v1370_v28 = vsel %vm484_vm1, %v4577_v33, %v3633_v5  ;;  %v1369_v50 = vsel %vm484_vm1, %v4575_v32, %v3632_v9 }
 0x108   : > { %v3641_v60 = vpop.permute.xlu0 %3640  ;;  %v3657_v11 = vunpack.i.l.bf16 %v3656_v13  ;;  %v3658_v12 = vunpack.i.h.bf16 %v3656_v13 }
 0x109   : > { %v3643_v63 = vunpack.i.h.bf16 %v3641_v60  ;;  %v3642_v16 = vunpack.i.l.bf16 %v3641_v60 }
 0x10a   : > { %v1413_v35 = vsel %vm1398_vm4, %v1392_v21, %v3657_v11  ;;  %v1414_v44 = vsel %vm1398_vm4, %v1393_v36, %v3658_v12 }
 0x10b   : > { %v3666_v27 = vpop.permute.xlu1 %3665  ;;  %v1390_v43 = vsel %vm1377_vm3, %v1369_v50, %v3642_v16  ;;  %v1391_v29 = vsel %vm1377_vm3, %v1370_v28, %v3643_v63 }
 0x10c   : > { %v3651_v8 = vpop.permute.xlu0 %3650  ;;  %v3667_v56 = vunpack.i.l.bf16 %v3666_v27  ;;  %v3668_v20 = vunpack.i.h.bf16 %v3666_v27 }
 0x10d   : > { %v3653_v25 = vunpack.i.h.bf16 %v3651_v8  ;;  %v3652_v19 = vunpack.i.l.bf16 %v3651_v8 }
 0x10e   : > { %v1434_v49 = vsel %vm1419_vm5, %v1413_v35, %v3667_v56  ;;  %v1435_v34 = vsel %vm1419_vm5, %v1414_v44, %v3668_v20 }
 0x10f   : > { %v3676_v24 = vpop.permute.xlu1 %3675  ;;  %v1411_v32 = vsel %vm1398_vm4, %v1390_v43, %v3652_v19  ;;  %v1412_v6 = vsel %vm1398_vm4, %v1391_v29, %v3653_v25 }
 0x110   : > { %v3661_v22 = vpop.permute.xlu0 %3660  ;;  %v3678_v33 = vunpack.i.h.bf16 %v3676_v24  ;;  %v3677_v18 = vunpack.i.l.bf16 %v3676_v24 }
 0x111   : > { %v3662_v30 = vunpack.i.l.bf16 %v3661_v22  ;;  %v3663_v40 = vunpack.i.h.bf16 %v3661_v22 }
 0x112   : > { %v1455_v52 = vsel %vm1440_vm6, %v1434_v49, %v3677_v18  ;;  %v1456_v53 = vsel %vm1440_vm6, %v1435_v34, %v3678_v33  ;;  %v553_v34 = vld [vmem:[#allocation2 + $0xc8] sm:$0xff] }
 0x113   : > { %v3686_v62 = vpop.permute.xlu1 %3685  ;;  %v1432_v51 = vsel %vm1419_vm5, %v1411_v32, %v3662_v30  ;;  %v1433_v8 = vsel %vm1419_vm5, %v1412_v6, %v3663_v40  ;;  %v552_v30 = vld [vmem:[#allocation2 + $0xc0] sm:$0xff] }
 0x114   : > { %v3671_v15 = vpop.permute.xlu0 %3670  ;;  %v3688_v38 = vunpack.i.h.bf16 %v3686_v62  ;;  %v3687_v39 = vunpack.i.l.bf16 %v3686_v62 }
 0x115   : > { %v3672_v41 = vunpack.i.l.bf16 %v3671_v15  ;;  %v3673_v46 = vunpack.i.h.bf16 %v3671_v15 }
 0x116   : > { %v1476_v59 = vsel %vm1461_vm7, %v1455_v52, %v3687_v39  ;;  %v1477_v13 = vsel %vm1461_vm7, %v1456_v53, %v3688_v38 }
 0x117   : > { %v3696_v7 = vpop.permute.xlu1 %3695  ;;  %v1453_v24 = vsel %vm1440_vm6, %v1432_v51, %v3672_v41  ;;  %v1454_v62 = vsel %vm1440_vm6, %v1433_v8, %v3673_v46 }
 0x118   : > { %v3681_v17 = vpop.permute.xlu0 %3680  ;;  %v3698_v14 = vunpack.i.h.bf16 %v3696_v7  ;;  %v3697_v45 = vunpack.i.l.bf16 %v3696_v7 }
 0x119   : > { %v3682_v47 = vunpack.i.l.bf16 %v3681_v17  ;;  %v3683_v55 = vunpack.i.h.bf16 %v3681_v17 }
 0x11a   : > { %v1497_v22 = vsel %vm1482_vm8, %v1476_v59, %v3697_v45  ;;  %v1498_v61 = vsel %vm1482_vm8, %v1477_v13, %v3698_v14 }
 0x11b   : > { %v3706_v37 = vpop.permute.xlu1 %3705  ;;  %v1474_v10 = vsel %vm1461_vm7, %v1453_v24, %v3682_v47  ;;  %v1475_v48 = vsel %vm1461_vm7, %v1454_v62, %v3683_v55 }
 0x11c   : > { %v3691_v42 = vpop.permute.xlu0 %3690  ;;  %v3708_v3 = vunpack.i.h.bf16 %v3706_v37  ;;  %v3707_v26 = vunpack.i.l.bf16 %v3706_v37 }
 0x11d   : > { %v3693_v60 = vunpack.i.h.bf16 %v3691_v42  ;;  %v3692_v27 = vunpack.i.l.bf16 %v3691_v42 }
 0x11e   : > { %v1518_v5 = vsel %vm1503_vm9, %v1497_v22, %v3707_v26  ;;  %v1519_v9 = vsel %vm1503_vm9, %v1498_v61, %v3708_v3 }
 0x11f   : > { %v4836_v58 = vpop.permute.xlu1 %3715  ;;  %v1495_v12 = vsel %vm1482_vm8, %v1474_v10, %v3692_v27  ;;  %v1496_v56 = vsel %vm1482_vm8, %v1475_v48, %v3693_v60  ;;  %v1531_v20 = vpack.c.bf16 %v1519_v9, %v1518_v5 }
 0x120   : > { %v3701_v4 = vpop.permute.xlu0 %3700  ;;  %v3718_v0 = vunpack.i.h.bf16 %v4836_v58  ;;  %v3717_v43 = vunpack.i.l.bf16 %v4836_v58 }
 0x121   : > { %v3703_v11 = vunpack.i.h.bf16 %v3701_v4  ;;  %v3702_v63 = vunpack.i.l.bf16 %v3701_v4 }
 0x122   : > { %v1376_v41 = vsel %vm484_vm1, %v4611_v2, %v3718_v0  ;;  %v1375_v14 = vsel %vm484_vm1, %v4609_v1, %v3717_v43 }
 0x123   : > { %v4849_v16 = vpop.permute.xlu1 %3725  ;;  %v1516_v15 = vsel %vm1503_vm9, %v1495_v12, %v3702_v63  ;;  %v1517_v57 = vsel %vm1503_vm9, %v1496_v56, %v3703_v11 }
 0x124   : > { %v1530_v7 = vpack.c.bf16 %v1517_v57, %v1516_v15  ;;  %v3711_v31 = vpop.permute.xlu0 %3710  ;;  %v3728_v49 = vunpack.i.h.bf16 %v4849_v16  ;;  %v3727_v17 = vunpack.i.l.bf16 %v4849_v16 }
 0x125   : > { %v3713_v29 = vunpack.i.h.bf16 %v3711_v31  ;;  %v3712_v44 = vunpack.i.l.bf16 %v3711_v31 }
 0x126   : > { %3278 = vmatprep.mubr.msk.bf16.mxu0 %vm1577_vm10, %v1530_v7  ;;  %v1396_v3 = vsel %vm1377_vm3, %v1375_v14, %v3727_v17  ;;  %v1397_v26 = vsel %vm1377_vm3, %v1376_v41, %v3728_v49 }
 0x127   : > { %v3736_v21 = vpop.permute.xlu1 %3735  ;;  %3279 = vmatmul.mubr.msk.bf16.gmra.mrb[12].mxu0 %vm1577_vm10, %v1531_v20  ;;  %v1374_v47 = vsel %vm484_vm1, %v553_v34, %v3713_v29  ;;  %v1373_v42 = vsel %vm484_vm1, %v552_v30, %v3712_v44 }
 0x128   : > { %v3721_v25 = vpop.permute.xlu0 %3720  ;;  %v3738_v37 = vunpack.i.h.bf16 %v3736_v21  ;;  %v3737_v32 = vunpack.i.l.bf16 %v3736_v21 }
 0x129   : > { %v3723_v33 = vunpack.i.h.bf16 %v3721_v25  ;;  %v3722_v18 = vunpack.i.l.bf16 %v3721_v25 }
 0x12a   : > { %v1417_v53 = vsel %vm1398_vm4, %v1396_v3, %v3737_v32  ;;  %v1418_v2 = vsel %vm1398_vm4, %v1397_v26, %v3738_v37 }
 0x12b   : > { %v3746_v19 = vpop.permute.xlu1 %3745  ;;  %v1394_v51 = vsel %vm1377_vm3, %v1373_v42, %v3722_v18  ;;  %v1395_v52 = vsel %vm1377_vm3, %v1374_v47, %v3723_v33  ;;  %v4034_v33 = vld [vmem:[%s5544_s5 + $0x80] sm:$0xff]   ;;  %v4035_v18 = vld [vmem:[%s5544_s5 + $0x88] sm:$0xff]  }
 0x12c   : > { %v3731_v28 = vpop.permute.xlu0 %3730  ;;  %v3748_v38 = vunpack.i.h.bf16 %v3746_v19  ;;  %v3747_v39 = vunpack.i.l.bf16 %v3746_v19  ;;  %3286 = vmatprep.subr.bf16.mxu0 %v4034_v33 }
 0x12d   : > { %v3733_v45 = vunpack.i.h.bf16 %v3731_v28  ;;  %v3732_v46 = vunpack.i.l.bf16 %v3731_v28  ;;  %3287 = vmatpush3.bf16.msra.mxu0 %v4034_v33 }
 0x12e   : > { %v1438_v1 = vsel %vm1419_vm5, %v1417_v53, %v3747_v39  ;;  %v1439_v58 = vsel %vm1419_vm5, %v1418_v2, %v3748_v38  ;;  %3288 = vmatprep.subr.bf16.mxu0 %v4035_v18  ;;  %v4946_v39 = vld [vmem:[%s5543_s4] ss:$0 sm:$0xff] }
 0x12f   : > { %v3756_v50 = vpop.permute.xlu1 %3755  ;;  %v1415_v27 = vsel %vm1398_vm4, %v1394_v51, %v3732_v46  ;;  %v1416_v8 = vsel %vm1398_vm4, %v1395_v52, %v3733_v45 }
 0x130   : > { %v3741_v36 = vpop.permute.xlu0 %3740  ;;  %v3758_v59 = vunpack.i.h.bf16 %v3756_v50  ;;  %v3757_v13 = vunpack.i.l.bf16 %v3756_v50 }
 0x131   : > { %v3743_v61 = vunpack.i.h.bf16 %v3741_v36  ;;  %v3742_v62 = vunpack.i.l.bf16 %v3741_v36  ;;  %3289 = vmatpush3.bf16.msra.mxu0 %v4035_v18 }
 0x132   : > { %v1459_v16 = vsel %vm1440_vm6, %v1438_v1, %v3757_v13  ;;  %v1460_v12 = vsel %vm1440_vm6, %v1439_v58, %v3758_v59 }
 0x133   : > { %v3766_v35 = vpop.permute.xlu1 %3765  ;;  %v1436_v21 = vsel %vm1419_vm5, %v1415_v27, %v3742_v62  ;;  %v1437_v25 = vsel %vm1419_vm5, %v1416_v8, %v3743_v61  ;;  %v4037_v61 = vld [vmem:[%s5544_s5] sm:$0xff]   ;;  %v4038_v62 = vld [vmem:[%s5544_s5 + $0x48] sm:$0xff]  }
 0x134   : > { %v3751_v6 = vpop.permute.xlu0 %3750  ;;  %v3768_v24 = vunpack.i.h.bf16 %v3766_v35  ;;  %v3767_v22 = vunpack.i.l.bf16 %v3766_v35 }
 0x135   : > { %v3753_v5 = vunpack.i.h.bf16 %v3751_v6  ;;  %v3752_v9 = vunpack.i.l.bf16 %v3751_v6 }
 0x136   : > { %v1480_v57 = vsel %vm1461_vm7, %v1459_v16, %v3767_v22  ;;  %v1481_v20 = vsel %vm1461_vm7, %v1460_v12, %v3768_v24  ;;  %v4036_v22 = vld [vmem:[%s5544_s5 + $0x40] sm:$0xff]  }
 0x137   : > { %v3776_v40 = vpop.permute.xlu1 %3775  ;;  %v1457_v50 = vsel %vm1440_vm6, %v1436_v21, %v3752_v9  ;;  %v1458_v36 = vsel %vm1440_vm6, %v1437_v25, %v3753_v5  ;;  %3182 = vmatprep.subr.bf16.mxu1 %v4036_v22  ;;  %v4039_v9 = vld [vmem:[%s5544_s5 + $0x8] sm:$0xff]  }
 0x138   : > { %v3761_v55 = vpop.permute.xlu0 %3760  ;;  %v3778_v10 = vunpack.i.h.bf16 %v3776_v40  ;;  %v3777_v4 = vunpack.i.l.bf16 %v3776_v40  ;;  %3183 = vmatpush3.bf16.msra.mxu1 %v4037_v61 }
 0x139   : > { %v3763_v56 = vunpack.i.h.bf16 %v3761_v55  ;;  %v3762_v15 = vunpack.i.l.bf16 %v3761_v55  ;;  %3184 = vmatprep.subr.bf16.mxu1 %v4038_v62 }
 0x13a   : > { %v1501_v19 = vsel %vm1482_vm8, %v1480_v57, %v3777_v4  ;;  %v1502_v28 = vsel %vm1482_vm8, %v1481_v20, %v3778_v10 }
 0x13b   : > { %v3786_v60 = vpop.permute.xlu1 %3785  ;;  %v1478_v29 = vsel %vm1461_vm7, %v1457_v50, %v3762_v15  ;;  %v1479_v44 = vsel %vm1461_vm7, %v1458_v36, %v3763_v56  ;;  %v4042_v50 = vld [vmem:[%s5544_s5 + $0x58] sm:$0xff]  }
 0x13c   : > { %v3771_v48 = vpop.permute.xlu0 %3770  ;;  %v3788_v11 = vunpack.i.h.bf16 %v3786_v60  ;;  %v3787_v63 = vunpack.i.l.bf16 %v3786_v60  ;;  %3185 = vmatpush3.bf16.msra.mxu1 %v4039_v9  ;;  %v4043_v36 = vld [vmem:[%s5544_s5 + $0x18] sm:$0xff]  }
 0x13d   : > { %v3773_v7 = vunpack.i.h.bf16 %v3771_v48  ;;  %v3772_v31 = vunpack.i.l.bf16 %v3771_v48  ;;  %v4040_v48 = vld [vmem:[%s5544_s5 + $0x50] sm:$0xff]  }
 0x13e   : > { %v1522_v0 = vsel %vm1503_vm9, %v1501_v19, %v3787_v63  ;;  %v1523_v43 = vsel %vm1503_vm9, %v1502_v28, %v3788_v11  ;;  %3186 = vmatprep.subr.bf16.mxu1 %v4040_v48 }
 0x13f   : > { %v1499_v30 = vsel %vm1482_vm8, %v1478_v29, %v3772_v31  ;;  %v1500_v34 = vsel %vm1482_vm8, %v1479_v44, %v3773_v7  ;;  %v1533_v6 = vpack.c.bf16 %v1523_v43, %v1522_v0  ;;  %v4041_v7 = vld [vmem:[%s5544_s5 + $0x10] sm:$0xff]   ;;  %v4044_v43 = vld [vmem:[%s5544_s5 + $0x60] sm:$0xff]  }
 0x140   : > { %v3781_v35 = vpop.permute.xlu0 %3780  ;;  %3187 = vmatpush3.bf16.msra.mxu1 %v4041_v7  ;;  %v4045_v29 = vld [vmem:[%s5544_s5 + $0x20] sm:$0xff]  }
 0x141   : > { %v3783_v49 = vunpack.i.h.bf16 %v3781_v35  ;;  %v3782_v17 = vunpack.i.l.bf16 %v3781_v35  ;;  %3188 = vmatprep.subr.bf16.mxu1 %v4042_v50 }
 0x143   : > { %v1520_v37 = vsel %vm1503_vm9, %v1499_v30, %v3782_v17  ;;  %v1521_v32 = vsel %vm1503_vm9, %v1500_v34, %v3783_v49  ;;  %v4046_v49 = vld [vmem:[%s5544_s5 + $0x68] sm:$0xff]  }
 0x144   : > { %v1532_v38 = vpack.c.bf16 %v1521_v32, %v1520_v37  ;;  %3189 = vmatpush3.bf16.msra.mxu1 %v4043_v36 }
 0x145   : > { %3190 = vmatprep.subr.bf16.mxu1 %v4044_v43 }
 0x146   : > { %3282 = vmatprep.mubr.msk.bf16.mxu0 %vm1577_vm10, %v1532_v38  ;;  %v4047_v38 = vld [vmem:[%s5544_s5 + $0x28] sm:$0xff]  }
 0x147   : > { %3283 = vmatmul.mubr.msk.bf16.gmra.mrb[16].mxu0 %vm1577_vm10, %v1533_v6 }
 0x148   : > { %3191 = vmatpush3.bf16.msra.mxu1 %v4045_v29 }
 0x149   : > { %3192 = vmatprep.subr.bf16.mxu1 %v4046_v49 }
 0x14c   : > { %3193 = vmatpush3.bf16.msra.mxu1 %v4047_v38 }
 0x19d   : > { %v3268_v40 = vpop.f32.mrb[0].mxu0 }
 0x19e   : > { %v1655_v41 = vadd.f32 %v3268_v40, %v4946_v39  ;;  %v1646_v14 = vpop.f32.mrb[1].mxu0 }
 0x19f   : > { %v1647_v45 = vadd.f32 %v4946_v39, %v1646_v14  ;;  %v3269_v46 = vpop.f32.mrb[2].mxu0 }
 0x1a0   : > { %v1727_v47 = vmax.f32 %v1655_v41, 0.0  ;;  %v1658_v42 = vadd.f32 %v3269_v46, %v4946_v39  ;;  %v1649_v3 = vpop.f32.mrb[3].mxu0  ;;  %v4048_v41 = vld [vmem:[%s5544_s5 + $0x70] sm:$0xff]  }
 0x1a1   : > { %v1725_v26 = vmax.f32 %v1647_v45, 0.0  ;;  %v1650_v51 = vadd.f32 %v4946_v39, %v1649_v3  ;;  %v4049_v45 = vld [vmem:[%s5544_s5 + $0x30] sm:$0xff]   ;;  %3194 = vmatprep.subr.bf16.mxu1 %v4048_v41 }
 0x1a2   : > { %1776 = vst.msk [vmem:[#allocation3 + $0x19] sm:$0xff] %vm1419_vm5, %v1727_v47  ;;  %v1728_v52 = vmax.f32 %v1658_v42, 0.0  ;;  %v4050_v47 = vld [vmem:[%s5544_s5 + $0x78] sm:$0xff]   ;;  %3195 = vmatpush3.bf16.msra.mxu1 %v4049_v45 }
 0x1a3   : > { %v1766_v53 = vmul.f32 %v1725_v26, %v4460_v23  ;;  %v1726_v2 = vmax.f32 %v1650_v51, 0.0  ;;  %v4051_v42 = vld [vmem:[%s5544_s5 + $0x38] sm:$0xff]   ;;  %3196 = vmatprep.subr.bf16.mxu1 %v4050_v47 }
 0x1a4   : > { %1777 = vst.msk [vmem:[#allocation3 + $0x21] sm:$0xff] %vm1419_vm5, %v1728_v52 }
 0x1a5   : > { %1768 = vst.msk [vmem:[#allocation3 + $0x1] sm:$0xff] %vm1419_vm5, %v1766_v53  ;;  %v1767_v55 = vmul.f32 %v1726_v2, %v4460_v23 }
 0x1a6   : > { %3197 = vmatpush3.bf16.msra.mxu1 %v4051_v42 }
 0x1a7   : > { %1769 = vst.msk [vmem:[#allocation3 + $0x9] sm:$0xff] %vm1419_vm5, %v1767_v55 }
 0x1a9   : > { %v4958_v1 = vld [vmem:[#allocation3 + $0x18] sm:$0xff] }
 0x1aa   : > { %v4968_v23 = vld [vmem:[#allocation3 + $0x19] sm:$0xff] }
 0x1ab   : > { %v1872_v58 = vld [vmem:[#allocation3 + $0x1a] sm:$0xff]  ;;  %v1873_v59 = vld [vmem:[#allocation3 + $0x22] sm:$0xff] }
 0x1ac   : > { %v4960_v13 = vld [vmem:[#allocation3 + $0x20] sm:$0xff]  ;;  %v3789_v60 = vpack.i.bf16 %v1873_v59, %v1872_v58 }
 0x1ad   : > { %v3794_v27 = vpack.i.bf16 %v4960_v13, %v4958_v1  ;;  %v4964_v8 = vld [vmem:[#allocation3 + $0x21] sm:$0xff] }
 0x1ae   : > { %3790 = vrot.lane.b32.xlu0 %v3789_v60, %s5560_s23  ;;  %v3799_v24 = vpack.i.bf16 %v4964_v8, %v4968_v23  ;;  %v1809_v10 = vld [vmem:[#allocation3 + $0x9] sm:$0xff]  ;;  %v1808_v4 = vld [vmem:[#allocation3 + $0x1] sm:$0xff] }
 0x1af   : > { %3795 = vrot.lane.b32.xlu1 %v3794_v27, %s4221_s9  ;;  %v3809_v5 = vpack.i.bf16 %v1809_v10, %v1808_v4  ;;  %v1824_v11 = vld [vmem:[#allocation3 + $0x2] sm:$0xff]  ;;  %v1825_v63 = vld [vmem:[#allocation3 + $0xa] sm:$0xff] }
 0x1b0   : > { %v3814_v20 = vpack.i.bf16 %v1825_v63, %v1824_v11 }
 0x1b3   : > { %3800 = vrot.lane.b32.xlu1 %v3799_v24, %s5560_s23 }
 0x1b7   : > { %3805 = vrot.lane.b32.xlu1 %v3789_v60, %s4220_s13 }
 0x1ba   : > { %v3272_v16 = vpop.f32.mrb[4].mxu0 }
 0x1bb   : > { %3810 = vrot.lane.b32.xlu1 %v3809_v5, %s5560_s23  ;;  %v1671_v12 = vadd.f32 %v3272_v16, %v4946_v39  ;;  %v1662_v56 = vpop.f32.mrb[5].mxu0 }
 0x1bc   : > { %v1663_v15 = vadd.f32 %v4946_v39, %v1662_v56  ;;  %v3273_v57 = vpop.f32.mrb[6].mxu0 }
 0x1bd   : > { %v1731_v31 = vmax.f32 %v1671_v12, 0.0  ;;  %v1674_v21 = vadd.f32 %v3273_v57, %v4946_v39  ;;  %v1665_v25 = vpop.f32.mrb[7].mxu0 }
 0x1be   : > { %v1729_v19 = vmax.f32 %v1663_v15, 0.0  ;;  %v1666_v28 = vadd.f32 %v4946_v39, %v1665_v25 }
 0x1bf   : > { %3815 = vrot.lane.b32.xlu1 %v3814_v20, %s4220_s13  ;;  %1780 = vst.msk [vmem:[#allocation3 + $0x49] sm:$0xff] %vm1419_vm5, %v1731_v31  ;;  %v1732_v35 = vmax.f32 %v1674_v21, 0.0 }
 0x1c0   : > { %1778 = vst.msk [vmem:[#allocation3 + $0x31] sm:$0xff] %vm1419_vm5, %v1729_v19  ;;  %v1730_v0 = vmax.f32 %v1666_v28, 0.0 }
 0x1c1   : > { %1781 = vst.msk [vmem:[#allocation3 + $0x51] sm:$0xff] %vm1419_vm5, %v1732_v35 }
 0x1c2   : > { %1779 = vst.msk [vmem:[#allocation3 + $0x39] sm:$0xff] %vm1419_vm5, %v1730_v0 }
 0x1c6   : > { %v5014_v44 = vld [vmem:[#allocation3 + $0x48] sm:$0xff] }
 0x1c7   : > { %v5034_v14 = vld [vmem:[#allocation3 + $0x49] sm:$0xff]  ;;  %v5062_v2 = vld [vmem:[#allocation3 + $0x31] sm:$0xff] }
 0x1c8   : > { %v5019_v17 = vld [vmem:[#allocation3 + $0x50] sm:$0xff] }
 0x1c9   : > { %v1923_v30 = vld [vmem:[#allocation3 + $0x4a] sm:$0xff]  ;;  %v1924_v34 = vld [vmem:[#allocation3 + $0x52] sm:$0xff]  ;;  %v3819_v33 = vpack.i.bf16 %v5019_v17, %v5014_v44  ;;  %v1922_v37 = vld [vmem:[#allocation3 + $0x3a] sm:$0xff] }
 0x1ca   : > { %v1921_v18 = vld [vmem:[#allocation3 + $0x32] sm:$0xff]  ;;  %v2423_v40 = vpack.c.bf16 %v1924_v34, %v1923_v30  ;;  %v3829_v3 = vpack.i.bf16 %v1924_v34, %v1923_v30 }
 0x1cb   : > { %v2420_v32 = vpack.c.bf16 %v1922_v37, %v1921_v18  ;;  %v5023_v6 = vld [vmem:[#allocation3 + $0x51] sm:$0xff]  ;;  %3820 = vrot.lane.b32.xlu0 %v3819_v33, %s4220_s13  ;;  %3835 = vrot.lane.b32.xlu1 %v3819_v33, %s4221_s9  ;;  %v5058_v53 = vld [vmem:[#allocation3 + $0x39] sm:$0xff]  ;;  %v3859_v10 = vpack.i.bf16 %v1922_v37, %v1921_v18 }
 0x1cc   : > { %v3824_v46 = vpack.i.bf16 %v5023_v6, %v5034_v14  ;;  %v5050_v26 = vld [vmem:[#allocation3 + $0x38] sm:$0xff]  ;;  %v5054_v51 = vld [vmem:[#allocation3 + $0x30] sm:$0xff]  ;;  %v3854_v55 = vpack.i.bf16 %v5058_v53, %v5062_v2 }
 0x1cd   : > { %3290 = vmatprep.mubr.msk.bf16.mxu0 %vm1419_vm5, %v2420_v32  ;;  %v3849_v52 = vpack.i.bf16 %v5050_v26, %v5054_v51 }
 0x1ce   : > { %3291 = vmatmul.mubr.msk.bf16.vlgmr.msra.gmra.mrb[20].mxu0 %vm1419_vm5, %v2423_v40 }
 0x1cf   : > { %3825 = vrot.lane.b32.xlu0 %v3824_v46, %s4221_s9  ;;  %3840 = vrot.lane.b32.xlu1 %v3824_v46, %s5560_s23 }
 0x1d3   : > { %3830 = vrot.lane.b32.xlu0 %v3829_v3, %s5560_s23  ;;  %3845 = vrot.lane.b32.xlu1 %v3829_v3, %s4220_s13 }
 0x1d7   : > { %3850 = vrot.lane.b32.xlu0 %v3849_v52, %s4220_s13  ;;  %3865 = vrot.lane.b32.xlu1 %v3849_v52, %s4221_s9 }
 0x1da   : > { %v3276_v58 = vpop.f32.mrb[8].mxu0 }
 0x1db   : > { %v1687_v59 = vadd.f32 %v3276_v58, %v4946_v39  ;;  %v1678_v60 = vpop.f32.mrb[9].mxu0  ;;  %3855 = vrot.lane.b32.xlu0 %v3854_v55, %s4221_s9  ;;  %3870 = vrot.lane.b32.xlu1 %v3854_v55, %s5560_s23 }
 0x1dc   : > { %v1679_v27 = vadd.f32 %v4946_v39, %v1678_v60  ;;  %v3277_v24 = vpop.f32.mrb[10].mxu0 }
 0x1dd   : > { %v1735_v22 = vmax.f32 %v1687_v59, 0.0  ;;  %v1690_v61 = vadd.f32 %v3277_v24, %v4946_v39  ;;  %v1681_v62 = vpop.f32.mrb[11].mxu0 }
 0x1de   : > { %v1733_v4 = vmax.f32 %v1679_v27, 0.0  ;;  %v1682_v5 = vadd.f32 %v4946_v39, %v1681_v62 }
 0x1df   : > { %1784 = vst.msk [vmem:[#allocation3 + $0x79] sm:$0xff] %vm1419_vm5, %v1735_v22  ;;  %v1736_v9 = vmax.f32 %v1690_v61, 0.0  ;;  %3860 = vrot.lane.b32.xlu0 %v3859_v10, %s5560_s23  ;;  %3875 = vrot.lane.b32.xlu1 %v3859_v10, %s4220_s13 }
 0x1e0   : > { %1782 = vst.msk [vmem:[#allocation3 + $0x61] sm:$0xff] %vm1419_vm5, %v1733_v4  ;;  %v1734_v48 = vmax.f32 %v1682_v5, 0.0 }
 0x1e1   : > { %1785 = vst.msk [vmem:[#allocation3 + $0x81] sm:$0xff] %vm1419_vm5, %v1736_v9 }
 0x1e2   : > { %1783 = vst.msk [vmem:[#allocation3 + $0x69] sm:$0xff] %vm1419_vm5, %v1734_v48 }
 0x1e6   : > { %v5078_v11 = vld [vmem:[#allocation3 + $0x78] sm:$0xff] }
 0x1e7   : > { %v5089_v21 = vld [vmem:[#allocation3 + $0x79] sm:$0xff]  ;;  %v5108_v0 = vld [vmem:[#allocation3 + $0x61] sm:$0xff] }
 0x1e8   : > { %v5080_v63 = vld [vmem:[#allocation3 + $0x80] sm:$0xff] }
 0x1e9   : > { %v1927_v16 = vld [vmem:[#allocation3 + $0x7a] sm:$0xff]  ;;  %v1928_v12 = vld [vmem:[#allocation3 + $0x82] sm:$0xff]  ;;  %v3879_v56 = vpack.i.bf16 %v5080_v63, %v5078_v11  ;;  %v1926_v57 = vld [vmem:[#allocation3 + $0x6a] sm:$0xff] }
 0x1ea   : > { %v1925_v15 = vld [vmem:[#allocation3 + $0x62] sm:$0xff]  ;;  %v2429_v31 = vpack.c.bf16 %v1928_v12, %v1927_v16  ;;  %v3889_v19 = vpack.i.bf16 %v1928_v12, %v1927_v16 }
 0x1eb   : > { %v2426_v20 = vpack.c.bf16 %v1926_v57, %v1925_v15  ;;  %v5084_v7 = vld [vmem:[#allocation3 + $0x81] sm:$0xff]  ;;  %3880 = vrot.lane.b32.xlu0 %v3879_v56, %s4220_s13  ;;  %3895 = vrot.lane.b32.xlu1 %v3879_v56, %s4221_s9  ;;  %v5104_v35 = vld [vmem:[#allocation3 + $0x69] sm:$0xff]  ;;  %v3919_v38 = vpack.i.bf16 %v1926_v57, %v1925_v15 }
 0x1ec   : > { %v3884_v25 = vpack.i.bf16 %v5084_v7, %v5089_v21  ;;  %v5096_v28 = vld [vmem:[#allocation3 + $0x68] sm:$0xff]  ;;  %v5100_v50 = vld [vmem:[#allocation3 + $0x60] sm:$0xff]  ;;  %v3914_v43 = vpack.i.bf16 %v5104_v35, %v5108_v0 }
 0x1ed   : > { %3294 = vmatprep.mubr.msk.bf16.mxu0 %vm1419_vm5, %v2426_v20  ;;  %v3909_v36 = vpack.i.bf16 %v5096_v28, %v5100_v50 }
 0x1ee   : > { %3295 = vmatmul.mubr.msk.bf16.gmra.mrb[24].mxu0 %vm1419_vm5, %v2429_v31 }
 0x1ef   : > { %3885 = vrot.lane.b32.xlu0 %v3884_v25, %s4221_s9  ;;  %3900 = vrot.lane.b32.xlu1 %v3884_v25, %s5560_s23 }
 0x1f3   : > { %3890 = vrot.lane.b32.xlu0 %v3889_v19, %s5560_s23  ;;  %3905 = vrot.lane.b32.xlu1 %v3889_v19, %s4220_s13 }
 0x1f7   : > { %3910 = vrot.lane.b32.xlu0 %v3909_v36, %s4220_s13  ;;  %3925 = vrot.lane.b32.xlu1 %v3909_v36, %s4221_s9 }
 0x1fa   : > { %v3280_v29 = vpop.f32.mrb[12].mxu0 }
 0x1fb   : > { %v1703_v49 = vadd.f32 %v3280_v29, %v4946_v39  ;;  %v1694_v30 = vpop.f32.mrb[13].mxu0  ;;  %3915 = vrot.lane.b32.xlu0 %v3914_v43, %s4221_s9  ;;  %3930 = vrot.lane.b32.xlu1 %v3914_v43, %s5560_s23 }
 0x1fc   : > { %v1695_v34 = vadd.f32 %v4946_v39, %v1694_v30  ;;  %v3281_v33 = vpop.f32.mrb[14].mxu0 }
 0x1fd   : > { %v1739_v18 = vmax.f32 %v1703_v49, 0.0  ;;  %v1706_v37 = vadd.f32 %v3281_v33, %v4946_v39  ;;  %v1697_v32 = vpop.f32.mrb[15].mxu0 }
 0x1fe   : > { %v1737_v40 = vmax.f32 %v1695_v34, 0.0  ;;  %v1698_v41 = vadd.f32 %v4946_v39, %v1697_v32 }
 0x1ff   : > { %1788 = vst.msk [vmem:[#allocation3 + $0xa9] sm:$0xff] %vm1419_vm5, %v1739_v18  ;;  %v1740_v45 = vmax.f32 %v1706_v37, 0.0  ;;  %3920 = vrot.lane.b32.xlu0 %v3919_v38, %s5560_s23  ;;  %3935 = vrot.lane.b32.xlu1 %v3919_v38, %s4220_s13 }
 0x200   : > { %1786 = vst.msk [vmem:[#allocation3 + $0x91] sm:$0xff] %vm1419_vm5, %v1737_v40  ;;  %v1738_v46 = vmax.f32 %v1698_v41, 0.0 }
 0x201   : > { %1789 = vst.msk [vmem:[#allocation3 + $0xb1] sm:$0xff] %vm1419_vm5, %v1740_v45 }
 0x202   : > { %1787 = vst.msk [vmem:[#allocation3 + $0x99] sm:$0xff] %vm1419_vm5, %v1738_v46 }
 0x206   : > { %v5124_v47 = vld [vmem:[#allocation3 + $0xa8] sm:$0xff] }
 0x207   : > { %v5137_v61 = vld [vmem:[#allocation3 + $0xa9] sm:$0xff]  ;;  %v5150_v9 = vld [vmem:[#allocation3 + $0x91] sm:$0xff] }
 0x208   : > { %v5126_v42 = vld [vmem:[#allocation3 + $0xb0] sm:$0xff] }
 0x209   : > { %v1931_v3 = vld [vmem:[#allocation3 + $0xaa] sm:$0xff]  ;;  %v1932_v52 = vld [vmem:[#allocation3 + $0xb2] sm:$0xff]  ;;  %v3939_v55 = vpack.i.bf16 %v5126_v42, %v5124_v47  ;;  %v1930_v59 = vld [vmem:[#allocation3 + $0x9a] sm:$0xff] }
 0x20a   : > { %v1929_v58 = vld [vmem:[#allocation3 + $0x92] sm:$0xff]  ;;  %v2435_v22 = vpack.c.bf16 %v1932_v52, %v1931_v3  ;;  %v3949_v48 = vpack.i.bf16 %v1932_v52, %v1931_v3 }
 0x20b   : > { %v2432_v60 = vpack.c.bf16 %v1930_v59, %v1929_v58  ;;  %v5130_v27 = vld [vmem:[#allocation3 + $0xb1] sm:$0xff]  ;;  %3940 = vrot.lane.b32.xlu0 %v3939_v55, %s4220_s13  ;;  %3955 = vrot.lane.b32.xlu1 %v3939_v55, %s4221_s9  ;;  %v5146_v5 = vld [vmem:[#allocation3 + $0x99] sm:$0xff]  ;;  %v3984_v12 = vpack.i.bf16 %v1930_v59, %v1929_v58 }
 0x20c   : > { %v5132_v24 = vld [vmem:[#allocation3 + $0x98] sm:$0xff]  ;;  %v5139_v62 = vld [vmem:[#allocation3 + $0x90] sm:$0xff]  ;;  %v3944_v10 = vpack.i.bf16 %v5130_v27, %v5137_v61  ;;  %v3979_v16 = vpack.i.bf16 %v5146_v5, %v5150_v9 }
 0x20d   : > { %3298 = vmatprep.mubr.msk.bf16.mxu0 %vm1419_vm5, %v2432_v60  ;;  %v3974_v4 = vpack.i.bf16 %v5132_v24, %v5139_v62 }
 0x20e   : > { %3299 = vmatmul.mubr.msk.bf16.gmra.mrb[28].mxu0 %vm1419_vm5, %v2435_v22 }
 0x20f   : > { %3945 = vrot.lane.b32.xlu0 %v3944_v10, %s4221_s9  ;;  %3975 = vrot.lane.b32.xlu1 %v3974_v4, %s4221_s9 }
 0x213   : > { %3950 = vrot.lane.b32.xlu0 %v3949_v48, %s5560_s23  ;;  %3980 = vrot.lane.b32.xlu1 %v3979_v16, %s5560_s23 }
 0x217   : > { %3960 = vrot.lane.b32.xlu0 %v3974_v4, %s4220_s13  ;;  %3985 = vrot.lane.b32.xlu1 %v3984_v12, %s4220_s13 }
 0x21a   : > { %v3284_v56 = vpop.f32.mrb[16].mxu0 }
 0x21b   : > { %v1719_v15 = vadd.f32 %v3284_v56, %v4946_v39  ;;  %v1710_v57 = vpop.f32.mrb[17].mxu0  ;;  %3965 = vrot.lane.b32.xlu0 %v3979_v16, %s4221_s9  ;;  %3990 = vrot.lane.b32.xlu1 %v3944_v10, %s5560_s23 }
 0x21c   : > { %v1711_v20 = vadd.f32 %v4946_v39, %v1710_v57  ;;  %v3285_v31 = vpop.f32.mrb[18].mxu0 }
 0x21d   : > { %v1743_v25 = vmax.f32 %v1719_v15, 0.0  ;;  %v1722_v19 = vadd.f32 %v3285_v31, %v4946_v39  ;;  %v1713_v36 = vpop.f32.mrb[19].mxu0 }
 0x21e   : > { %v1741_v43 = vmax.f32 %v1711_v20, 0.0  ;;  %v1714_v29 = vadd.f32 %v4946_v39, %v1713_v36 }
 0x21f   : > { %v1770_v49 = vmul.f32 %v1743_v25, %v4506_v54  ;;  %v1744_v30 = vmax.f32 %v1722_v19, 0.0  ;;  %3970 = vrot.lane.b32.xlu0 %v3984_v12, %s5560_s23  ;;  %3995 = vrot.lane.b32.xlu1 %v3949_v48, %s4220_s13 }
 0x220   : > { %1790 = vst.msk [vmem:[#allocation3 + $0xc1] sm:$0xff] %vm1419_vm5, %v1741_v43  ;;  %v1742_v34 = vmax.f32 %v1714_v29, 0.0  ;;  %v3791_v12 = vpop.permute.xlu0 %3790 }
 0x221   : > { %1773 = vst.msk [vmem:[#allocation3 + $0xd9] sm:$0xff] %vm1419_vm5, %v1770_v49  ;;  %v1771_v33 = vmul.f32 %v1744_v30, %v4506_v54  ;;  %v5170_v18 = vpop.permute.xlu1 %3795 }
 0x222   : > { %1791 = vst.msk [vmem:[#allocation3 + $0xc9] sm:$0xff] %vm1419_vm5, %v1742_v34 }
 0x223   : > { %1774 = vst.msk [vmem:[#allocation3 + $0xe1] sm:$0xff] %vm1419_vm5, %v1771_v33 }
 0x225   : > { %v5174_v39 = vpop.permute.xlu1 %3800 }
 0x227   : > { %v1901_v37 = vld [vmem:[#allocation3 + $0xc0] sm:$0xff] }
 0x228   : > { %v5184_v58 = vld [vmem:[#allocation3 + $0xc1] sm:$0xff]  ;;  %v1903_v4 = vld [vmem:[#allocation3 + $0xd8] sm:$0xff] }
 0x229   : > { %v1933_v32 = vld [vmem:[#allocation3 + $0xc2] sm:$0xff]  ;;  %v1934_v38 = vld [vmem:[#allocation3 + $0xca] sm:$0xff]  ;;  %v5180_v54 = vpop.permute.xlu1 %3805  ;;  %v1919_v15 = vld [vmem:[#allocation3 + $0xd9] sm:$0xff] }
 0x22a   : > { %v1902_v40 = vld [vmem:[#allocation3 + $0xc8] sm:$0xff]  ;;  %v2438_v41 = vpack.c.bf16 %v1934_v38, %v1933_v32  ;;  %v1935_v46 = vld [vmem:[#allocation3 + $0xda] sm:$0xff]  ;;  %v4009_v60 = vpack.i.bf16 %v1934_v38, %v1933_v32  ;;  %v3792_v32 = vunpack.i.l.bf16 %v3791_v12 }
 0x22b   : > { %v3999_v45 = vpack.i.bf16 %v1902_v40, %v1901_v37  ;;  %v1936_v3 = vld [vmem:[#allocation3 + $0xe2] sm:$0xff]  ;;  %v3793_v37 = vunpack.i.h.bf16 %v3791_v12 }
 0x22c   : > { %v2441_v52 = vpack.c.bf16 %v1936_v3, %v1935_v46  ;;  %v5176_v55 = vld [vmem:[#allocation3 + $0xc9] sm:$0xff]  ;;  %3302 = vmatprep.mubr.msk.bf16.mxu0 %vm1419_vm5, %v2438_v41  ;;  %v1904_v10 = vld [vmem:[#allocation3 + $0xe0] sm:$0xff]  ;;  %v2370_v12 = vsel %vm1419_vm5, %v4968_v23, %v3792_v32  ;;  %v3808_v23 = vunpack.i.h.bf16 %v5180_v54 }
 0x22d   : > { %4000 = vrot.lane.b32.xlu0 %v3999_v45, %s4220_s13  ;;  %4025 = vrot.lane.b32.xlu1 %v3999_v45, %s4221_s9  ;;  %v4004_v59 = vpack.i.bf16 %v5176_v55, %v5184_v58  ;;  %v3811_v22 = vpop.permute.xlu1 %3810  ;;  %v4014_v48 = vpack.i.bf16 %v1904_v10, %v1903_v4  ;;  %v1920_v16 = vld [vmem:[#allocation3 + $0xe1] sm:$0xff] }
 0x22e   : > { %3303 = vmatmul.mubr.msk.bf16.gmra.mrb[32].mxu0 %vm1419_vm5, %v2441_v52  ;;  %v4019_v57 = vpack.i.bf16 %v1920_v16, %v1919_v15  ;;  %v3813_v43 = vunpack.i.h.bf16 %v3811_v22  ;;  %v3812_v29 = vunpack.i.l.bf16 %v3811_v22  ;;  %v1792_v38 = vld [vmem:[#allocation3] sm:$0xff]  ;;  %v1793_v40 = vld [vmem:[#allocation3 + $0x8] sm:$0xff]  ;;  %v3797_v22 = vunpack.i.l.bf16 %v5170_v18 }
 0x230   : > { %v2322_v41 = vsel %vm1419_vm5, %v1793_v40, %v3813_v43  ;;  %v2321_v45 = vsel %vm1419_vm5, %v1792_v38, %v3812_v29 }
 0x231   : > { %4005 = vrot.lane.b32.xlu0 %v4004_v59, %s4221_s9  ;;  %v3816_v56 = vpop.permute.xlu1 %3815 }
 0x232   : > { %v3818_v49 = vunpack.i.h.bf16 %v3816_v56  ;;  %v3817_v30 = vunpack.i.l.bf16 %v3816_v56  ;;  %v2371_v56 = vsel %vm1419_vm5, %v4964_v8, %v3793_v37  ;;  %v3807_v37 = vunpack.i.l.bf16 %v5180_v54 }
 0x234   : > { %v2337_v52 = vsel %vm1503_vm9, %v2321_v45, %v3817_v30  ;;  %v2338_v59 = vsel %vm1503_vm9, %v2322_v41, %v3818_v49  ;;  %v3803_v30 = vunpack.i.h.bf16 %v5174_v39 }
 0x235   : > { %4010 = vrot.lane.b32.xlu0 %v4009_v60, %s5560_s23  ;;  %v3798_v60 = vunpack.i.h.bf16 %v5170_v18  ;;  %v2354_v43 = vsel %vm2353_vm12, %v2337_v52, %v3797_v22 }
 0x236   : > { %v2324_v54 = vsel %vm1419_vm5, %v4960_v13, %v3803_v30 }
 0x237   : > { %v2355_v29 = vsel %vm2353_vm12, %v2338_v59, %v3798_v60 }
 0x238   : > { %v2418_v41 = vpack.c.bf16 %v2355_v29, %v2354_v43 }
 0x239   : > { %4015 = vrot.lane.b32.xlu0 %v4014_v48, %s4220_s13  ;;  %s5478_s13 = scalar_lea.hbm %s5546_s7, %s3157_s0 }
 0x23d   : > { %4020 = vrot.lane.b32.xlu0 %v4019_v57, %s4221_s9  ;;  %v3821_v20 = vpop.permute.xlu0 %3820  ;;  %v5192_v31 = vpop.permute.xlu1 %3835  ;;  %s392_s9 = sand.u32 1, %s4186_s25  }
 0x23e   : > { %v3823_v45 = vunpack.i.h.bf16 %v3821_v20  ;;  %s3078_s12 = sshll.u32 %s392_s9, 7  ;;  %s5486_s27 = scalar_lea.sflag [#allocation5], %s392_s9 }
 0x23f   : > { %s5416_s22 = scalar_lea.vmem [#allocation4], %s3078_s12  ;;  %s4222_s12 = smov [#allocation4]  }
 0x240   : > { %s2940_s16 = sshll.u32 %s5416_s22, 4  ;;  %s4120_s17 = sshll.u32 %s4222_s12, 4  ;;  %s5480_s16 = int_to_ptr.vmem [resolvable:$true] %s2940_s16  ;;  %s4121_s17 = int_to_ptr.vmem [resolvable:$false] %s4120_s17 }
 0x241   : > { %v5194_v25 = vpop.permute.xlu0 %3825  ;;  %v5196_v19 = vpop.permute.xlu1 %3840  ;;  %s4116_s28 = scalar_lea.vmem %s5480_s16, 2048  ;;  %s4122_s20 = scalar_lea.vmem %s4121_s17, 4096 }
 0x242   : > { %v3828_v59 = vunpack.i.h.bf16 %v5194_v25  ;;  %v3827_v60 = vunpack.i.l.bf16 %v5194_v25  ;;  %p4117_p7 = scmp.ne.s32.totalorder %s5480_s16, %s4116_s28  ;;  %p4123_p11 = scmp.lt.s32.totalorder %s5480_s16, %s4121_s17 }
 0x243   : > { %p4124_p12 = scmp.lt.s32.totalorder %s4122_s20, %s4116_s28 }
 0x244   : > { %p4118_p9 = pnand %p4117_p7, %p4315_p3 }
 0x245   : > { %v5198_v36 = vpop.permute.xlu0 %3830  ;;  %v5200_v34 = vpop.permute.xlu1 %3845  ;;  %p4125_p13 = por %p4124_p12, %p4123_p11 }
 0x246   : > { %p4119_p10 = pneg %p4118_p9 }
 0x248   : > { %p4126_p0 = pnand %p4125_p13, %p4119_p10 }
 0x249   : > { %v3851_v33 = vpop.permute.xlu0 %3850  ;;  %v3866_v4 = vpop.permute.xlu1 %3865 }
 0x24a   : > { %v3853_v46 = vunpack.i.h.bf16 %v3851_v33  ;;  %v3852_v3 = vunpack.i.l.bf16 %v3851_v33  ;;  %v3802_v33 = vunpack.i.l.bf16 %v5174_v39  ;;  %v3867_v52 = vunpack.i.l.bf16 %v3866_v4 }
 0x24c   : > { %v2386_v15 = vsel %vm1503_vm9, %v2370_v12, %v3852_v3  ;;  %v2387_v57 = vsel %vm1503_vm9, %v2371_v56, %v3853_v46  ;;  %v3822_v46 = vunpack.i.l.bf16 %v3821_v20  ;;  %v3868_v3 = vunpack.i.h.bf16 %v3866_v4 }
 0x24d   : > { %v3856_v10 = vpop.permute.xlu0 %3855  ;;  %v3871_v22 = vpop.permute.xlu1 %3870  ;;  %v2323_v20 = vsel %vm1419_vm5, %v4958_v1, %v3802_v33 }
 0x24e   : > { %v3858_v48 = vunpack.i.h.bf16 %v3856_v10  ;;  %v3857_v16 = vunpack.i.l.bf16 %v3856_v10  ;;  %v2339_v25 = vsel %vm1503_vm9, %v2323_v20, %v3807_v37  ;;  %v3873_v30 = vunpack.i.h.bf16 %v3871_v22 }
 0x24f   : > { %v2356_v56 = vsel %vm2353_vm12, %v2339_v25, %v3867_v52  ;;  %v3872_v33 = vunpack.i.l.bf16 %v3871_v22  ;;  %v3833_v37 = vunpack.i.h.bf16 %v5198_v36  ;;  %v3837_v22 = vunpack.i.l.bf16 %v5192_v31 }
 0x250   : > { %v2402_v18 = vsel %vm2353_vm12, %v2386_v15, %v3857_v16  ;;  %v2403_v49 = vsel %vm2353_vm12, %v2387_v57, %v3858_v48  ;;  %v2340_v16 = vsel %vm1503_vm9, %v2324_v54, %v3808_v23 }
 0x251   : > { %v3861_v32 = vpop.permute.xlu0 %3860  ;;  %v2419_v8 = vpack.c.bf16 %v2403_v49, %v2402_v18  ;;  %v2357_v13 = vsel %vm2353_vm12, %v2340_v16, %v3868_v3  ;;  %v3876_v15 = vpop.permute.xlu1 %3875 }
 0x252   : > { %v3863_v38 = vunpack.i.h.bf16 %v3861_v32  ;;  %v3862_v40 = vunpack.i.l.bf16 %v3861_v32  ;;  %v2421_v1 = vpack.c.bf16 %v2357_v13, %v2356_v56  ;;  %v3878_v23 = vunpack.i.h.bf16 %v3876_v15 }
 0x253   : > { %2649 = vmatprep.mubr.bf16.mxu1 %v2419_v8  ;;  %v3877_v32 = vunpack.i.l.bf16 %v3876_v15  ;;  %v3847_v56 = vunpack.i.l.bf16 %v5200_v34 }
 0x254   : > { %v2373_v39 = vsel %vm1419_vm5, %v5058_v53, %v3863_v38  ;;  %v2372_v10 = vsel %vm1419_vm5, %v5062_v2, %v3862_v40  ;;  %2650 = vmatmul.mubr.bf16.vlgmr.msra.gmra.mrb[0].mxu1 %v2418_v41  ;;  %v3832_v38 = vunpack.i.l.bf16 %v5198_v36  ;;  %v2325_v41 = vsel %vm1419_vm5, %v5054_v51, %v3872_v33 }
 0x255   : > { %v2388_v4 = vsel %vm1503_vm9, %v2372_v10, %v3822_v46  ;;  %v2389_v48 = vsel %vm1503_vm9, %v2373_v39, %v3823_v45  ;;  %v2326_v45 = vsel %vm1419_vm5, %v5050_v26, %v3873_v30  ;;  %v2341_v52 = vsel %vm1503_vm9, %v2325_v41, %v3877_v32 }
 0x256   : > { %v2404_v53 = vsel %vm2353_vm12, %v2388_v4, %v3827_v60  ;;  %v2405_v12 = vsel %vm2353_vm12, %v2389_v48, %v3828_v59  ;;  %v2342_v59 = vsel %vm1503_vm9, %v2326_v45, %v3878_v23  ;;  %v3838_v60 = vunpack.i.h.bf16 %v5192_v31 }
 0x257   : > { %v2422_v2 = vpack.c.bf16 %v2405_v12, %v2404_v53  ;;  %v2374_v36 = vsel %vm1419_vm5, %v5034_v14, %v3832_v38  ;;  %v2375_v51 = vsel %vm1419_vm5, %v5023_v6, %v3833_v37  ;;  %v2358_v4 = vsel %vm2353_vm12, %v2341_v52, %v3837_v22 }
 0x258   : > { %v2359_v48 = vsel %vm2353_vm12, %v2342_v59, %v3838_v60  ;;  %v3843_v14 = vunpack.i.h.bf16 %v5196_v19  ;;  %v3842_v53 = vunpack.i.l.bf16 %v5196_v19  ;;  %v3848_v6 = vunpack.i.h.bf16 %v5200_v34 }
 0x259   : > { %2657 = vmatprep.mubr.bf16.mxu1 %v2422_v2 }
 0x25a   : > { %v2327_v34 = vsel %vm1419_vm5, %v5014_v44, %v3842_v53  ;;  %v2328_v41 = vsel %vm1419_vm5, %v5019_v17, %v3843_v14 }
 0x25c   : > { %2658 = vmatmul.mubr.bf16.gmra.mrb[4].mxu1 %v2421_v1  ;;  %v2424_v1 = vpack.c.bf16 %v2359_v48, %v2358_v4 }
 0x25d   : > { %v3881_v57 = vpop.permute.xlu0 %3880  ;;  %v5240_v43 = vpop.permute.xlu1 %3895 }
 0x25e   : > { %v3883_v30 = vunpack.i.h.bf16 %v3881_v57  ;;  %v3882_v33 = vunpack.i.l.bf16 %v3881_v57 }
 0x261   : > { %v3886_v29 = vpop.permute.xlu0 %3885  ;;  %v5242_v18 = vpop.permute.xlu1 %3900 }
 0x262   : > { %v3887_v37 = vunpack.i.l.bf16 %v3886_v29 }
 0x265   : > { %v5244_v49 = vpop.permute.xlu0 %3890  ;;  %v5248_v40 = vpop.permute.xlu1 %3905 }
 0x266   : > { %v3893_v48 = vunpack.i.h.bf16 %v5244_v49 }
 0x269   : > { %v3911_v8 = vpop.permute.xlu0 %3910  ;;  %v3926_v25 = vpop.permute.xlu1 %3925 }
 0x26a   : > { %v3913_v46 = vunpack.i.h.bf16 %v3911_v8  ;;  %v3912_v3 = vunpack.i.l.bf16 %v3911_v8  ;;  %v3928_v23 = vunpack.i.h.bf16 %v3926_v25  ;;  %v3927_v32 = vunpack.i.l.bf16 %v3926_v25 }
 0x26b   : > { %v3888_v8 = vunpack.i.h.bf16 %v3886_v29  ;;  %v2344_v29 = vsel %vm1503_vm9, %v2328_v41, %v3848_v6  ;;  %v3892_v25 = vunpack.i.l.bf16 %v5244_v49  ;;  %v2379_v49 = vsel %vm1419_vm5, %v5084_v7, %v3893_v48 }
 0x26c   : > { %v2391_v26 = vsel %vm1503_vm9, %v2375_v51, %v3913_v46  ;;  %v2390_v20 = vsel %vm1503_vm9, %v2374_v36, %v3912_v3  ;;  %v2343_v46 = vsel %vm1503_vm9, %v2327_v34, %v3847_v56  ;;  %v2361_v44 = vsel %vm2353_vm12, %v2344_v29, %v3928_v23 }
 0x26d   : > { %v3916_v39 = vpop.permute.xlu0 %3915  ;;  %v2360_v52 = vsel %vm2353_vm12, %v2343_v46, %v3927_v32  ;;  %v3931_v17 = vpop.permute.xlu1 %3930  ;;  %v3897_v56 = vunpack.i.l.bf16 %v5240_v43  ;;  %v3902_v7 = vunpack.i.l.bf16 %v5242_v18  ;;  %v3907_v34 = vunpack.i.l.bf16 %v5248_v40 }
 0x26e   : > { %v3918_v10 = vunpack.i.h.bf16 %v3916_v39  ;;  %v3917_v54 = vunpack.i.l.bf16 %v3916_v39  ;;  %v2427_v59 = vpack.c.bf16 %v2361_v44, %v2360_v52  ;;  %v3933_v51 = vunpack.i.h.bf16 %v3931_v17 }
 0x270   : > { %v2406_v31 = vsel %vm2353_vm12, %v2390_v20, %v3917_v54  ;;  %v2407_v16 = vsel %vm2353_vm12, %v2391_v26, %v3918_v10  ;;  %v3932_v10 = vunpack.i.l.bf16 %v3931_v17  ;;  %v2331_v17 = vsel %vm1419_vm5, %v5078_v11, %v3902_v7 }
 0x271   : > { %v3921_v12 = vpop.permute.xlu0 %3920  ;;  %v2425_v2 = vpack.c.bf16 %v2407_v16, %v2406_v31  ;;  %v3936_v39 = vpop.permute.xlu1 %3935  ;;  %v2330_v31 = vsel %vm1419_vm5, %v5096_v28, %v3933_v51  ;;  %v2378_v28 = vsel %vm1419_vm5, %v5089_v21, %v3892_v25  ;;  %v3908_v21 = vunpack.i.h.bf16 %v5248_v40 }
 0x272   : > { %v3923_v13 = vunpack.i.h.bf16 %v3921_v12  ;;  %v3922_v15 = vunpack.i.l.bf16 %v3921_v12  ;;  %v3938_v26 = vunpack.i.h.bf16 %v3936_v39  ;;  %v3937_v20 = vunpack.i.l.bf16 %v3936_v39 }
 0x273   : > { %2665 = vmatprep.mubr.bf16.mxu1 %v2425_v2  ;;  %v2329_v16 = vsel %vm1419_vm5, %v5100_v50, %v3932_v10  ;;  %v3898_v2 = vunpack.i.h.bf16 %v5240_v43  ;;  %v2347_v51 = vsel %vm1503_vm9, %v2331_v17, %v3907_v34 }
 0x274   : > { %v2377_v38 = vsel %vm1419_vm5, %v5104_v35, %v3923_v13  ;;  %v2376_v19 = vsel %vm1419_vm5, %v5108_v0, %v3922_v15  ;;  %2666 = vmatmul.mubr.bf16.gmra.mrb[8].mxu1 %v2424_v1  ;;  %v2345_v6 = vsel %vm1503_vm9, %v2329_v16, %v3937_v20  ;;  %v2346_v12 = vsel %vm1503_vm9, %v2330_v31, %v3938_v26 }
 0x275   : > { %v2392_v57 = vsel %vm1503_vm9, %v2376_v19, %v3882_v33  ;;  %v2393_v45 = vsel %vm1503_vm9, %v2377_v38, %v3883_v30  ;;  %v2362_v23 = vsel %vm2353_vm12, %v2345_v6, %v3897_v56  ;;  %v2363_v32 = vsel %vm2353_vm12, %v2346_v12, %v3898_v2 }
 0x276   : > { %v2408_v35 = vsel %vm2353_vm12, %v2392_v57, %v3887_v37  ;;  %v2409_v3 = vsel %vm2353_vm12, %v2393_v45, %v3888_v8  ;;  %v3903_v37 = vunpack.i.h.bf16 %v5242_v18  ;;  %v2430_v45 = vpack.c.bf16 %v2363_v32, %v2362_v23 }
 0x277   : > { %v2428_v0 = vpack.c.bf16 %v2409_v3, %v2408_v35 }
 0x278   : > { %v2332_v40 = vsel %vm1419_vm5, %v5080_v63, %v3903_v37 }
 0x279   : > { %2673 = vmatprep.mubr.bf16.mxu1 %v2428_v0 }
 0x27c   : > { %2674 = vmatmul.mubr.bf16.gmra.mrb[12].mxu1 %v2427_v59 }
 0x27d   : > { %v3941_v60 = vpop.permute.xlu0 %3940  ;;  %v5290_v54 = vpop.permute.xlu1 %3955 }
 0x27e   : > { %v3943_v46 = vunpack.i.h.bf16 %v3941_v60  ;;  %v3942_v29 = vunpack.i.l.bf16 %v3941_v60 }
 0x281   : > { %v3946_v22 = vpop.permute.xlu0 %3945  ;;  %v3976_v13 = vpop.permute.xlu1 %3975 }
 0x282   : > { %v3978_v35 = vunpack.i.h.bf16 %v3976_v13  ;;  %v3977_v3 = vunpack.i.l.bf16 %v3976_v13  ;;  %v3948_v52 = vunpack.i.h.bf16 %v3946_v22  ;;  %v3947_v44 = vunpack.i.l.bf16 %v3946_v22 }
 0x283   : > { %v2348_v22 = vsel %vm1503_vm9, %v2332_v40, %v3908_v21 }
 0x284   : > { %v2364_v26 = vsel %vm2353_vm12, %v2347_v51, %v3977_v3  ;;  %v2365_v63 = vsel %vm2353_vm12, %v2348_v22, %v3978_v35 }
 0x285   : > { %v5288_v36 = vpop.permute.xlu0 %3950  ;;  %v3981_v0 = vpop.permute.xlu1 %3980  ;;  %v2433_v11 = vpack.c.bf16 %v2365_v63, %v2364_v26 }
 0x286   : > { %v3982_v48 = vunpack.i.l.bf16 %v3981_v0 }
 0x288   : > { %v2333_v2 = vsel %vm1419_vm5, %v5139_v62, %v3982_v48 }
 0x289   : > { %v3961_v4 = vpop.permute.xlu0 %3960  ;;  %v3986_v20 = vpop.permute.xlu1 %3985 }
 0x28a   : > { %v3963_v14 = vunpack.i.h.bf16 %v3961_v4  ;;  %v3962_v53 = vunpack.i.l.bf16 %v3961_v4  ;;  %v3983_v4 = vunpack.i.h.bf16 %v3981_v0  ;;  %v3988_v25 = vunpack.i.h.bf16 %v3986_v20 }
 0x28b   : > { %v3987_v31 = vunpack.i.l.bf16 %v3986_v20 }
 0x28c   : > { %v2394_v30 = vsel %vm1503_vm9, %v2378_v28, %v3962_v53  ;;  %v2395_v33 = vsel %vm1503_vm9, %v2379_v49, %v3963_v14  ;;  %v3953_v14 = vunpack.i.h.bf16 %v5288_v36  ;;  %v3952_v53 = vunpack.i.l.bf16 %v5288_v36 }
 0x28d   : > { %v3966_v15 = vpop.permute.xlu0 %3965  ;;  %v3991_v6 = vpop.permute.xlu1 %3990  ;;  %v2334_v12 = vsel %vm1419_vm5, %v5132_v24, %v3983_v4  ;;  %v2349_v49 = vsel %vm1503_vm9, %v2333_v2, %v3987_v31  ;;  %v3957_v36 = vunpack.i.l.bf16 %v5290_v54 }
 0x28e   : > { %v3968_v1 = vunpack.i.h.bf16 %v3966_v15  ;;  %v3967_v50 = vunpack.i.l.bf16 %v3966_v15  ;;  %v2350_v28 = vsel %vm1503_vm9, %v2334_v12, %v3988_v25  ;;  %v2383_v62 = vsel %vm1419_vm5, %v5130_v27, %v3953_v14 }
 0x28f   : > { %v2366_v7 = vsel %vm2353_vm12, %v2349_v49, %v3957_v36 }
 0x290   : > { %v2410_v43 = vsel %vm2353_vm12, %v2394_v30, %v3967_v50  ;;  %v2411_v8 = vsel %vm2353_vm12, %v2395_v33, %v3968_v1  ;;  %v3958_v50 = vunpack.i.h.bf16 %v5290_v54  ;;  %v2382_v33 = vsel %vm1419_vm5, %v5137_v61, %v3952_v53 }
 0x291   : > { %v3971_v38 = vpop.permute.xlu0 %3970  ;;  %v2431_v19 = vpack.c.bf16 %v2411_v8, %v2410_v43  ;;  %v3996_v21 = vpop.permute.xlu1 %3995 }
 0x292   : > { %v3973_v41 = vunpack.i.h.bf16 %v3971_v38  ;;  %v3972_v57 = vunpack.i.l.bf16 %v3971_v38  ;;  %v2367_v54 = vsel %vm2353_vm12, %v2350_v28, %v3958_v50  ;;  %v5403_v28 = vld [vmem:[%s5545_s6] ss:$0 sm:$0xff] }
 0x293   : > { %2681 = vmatprep.mubr.bf16.mxu1 %v2431_v19  ;;  %v2436_v61 = vpack.c.bf16 %v2367_v54, %v2366_v7 }
 0x294   : > { %v2381_v18 = vsel %vm1419_vm5, %v5146_v5, %v3973_v41  ;;  %v2380_v59 = vsel %vm1419_vm5, %v5150_v9, %v3972_v57  ;;  %2682 = vmatmul.mubr.bf16.gmra.mrb[16].mxu1 %v2430_v45  ;;  %v3993_v41 = vunpack.i.h.bf16 %v3991_v6  ;;  %v3992_v57 = vunpack.i.l.bf16 %v3991_v6 }
 0x295   : > { %v2396_v60 = vsel %vm1503_vm9, %v2380_v59, %v3942_v29  ;;  %v2397_v39 = vsel %vm1503_vm9, %v2381_v18, %v3943_v46  ;;  %v3998_v46 = vunpack.i.h.bf16 %v3996_v21  ;;  %v3997_v29 = vunpack.i.l.bf16 %v3996_v21 }
 0x296   : > { %v2412_v5 = vsel %vm2353_vm12, %v2396_v60, %v3947_v44  ;;  %v2413_v10 = vsel %vm2353_vm12, %v2397_v39, %v3948_v52  ;;  %v2336_v40 = vsel %vm1419_vm5, %v5126_v42, %v3993_v41  ;;  %v2335_v17 = vsel %vm1419_vm5, %v5124_v47, %v3992_v57 }
 0x297   : > { %v2434_v9 = vpack.c.bf16 %v2413_v10, %v2412_v5  ;;  %v2351_v60 = vsel %vm1503_vm9, %v2335_v17, %v3997_v29  ;;  %v2352_v39 = vsel %vm1503_vm9, %v2336_v40, %v3998_v46 }
 0x299   : > { %2689 = vmatprep.mubr.bf16.mxu1 %v2434_v9 }
 0x29c   : > { %2690 = vmatmul.mubr.bf16.gmra.mrb[20].mxu1 %v2433_v11 }
 0x29f   : > { %v4001_v16 = vpop.permute.xlu0 %4000  ;;  %v4026_v45 = vpop.permute.xlu1 %4025 }
 0x2a0   : > { %v4003_v56 = vunpack.i.h.bf16 %v4001_v16  ;;  %v4002_v13 = vunpack.i.l.bf16 %v4001_v16  ;;  %v4028_v52 = vunpack.i.h.bf16 %v4026_v45  ;;  %v4027_v44 = vunpack.i.l.bf16 %v4026_v45 }
 0x2a1   : > { %v5338_v15 = vpop.f32.mrb[20].mxu0 }
 0x2a2   : > { %v5342_v1 = vpop.f32.mrb[21].mxu0  ;;  %v2398_v8 = vsel %vm1503_vm9, %v2382_v33, %v4002_v13  ;;  %v2399_v37 = vsel %vm1503_vm9, %v2383_v62, %v4003_v56  ;;  %v2368_v63 = vsel %vm2353_vm12, %v2351_v60, %v4027_v44  ;;  %v2369_v47 = vsel %vm2353_vm12, %v2352_v39, %v4028_v52 }
 0x2a3   : > { %v5346_v30 = vpop.f32.mrb[22].mxu0  ;;  %v4006_v24 = vpop.permute.xlu0 %4005  ;;  %v2439_v48 = vpack.c.bf16 %v2369_v47, %v2368_v63 }
 0x2a4   : > { %v4008_v23 = vunpack.i.h.bf16 %v4006_v24  ;;  %v4007_v32 = vunpack.i.l.bf16 %v4006_v24  ;;  %v5352_v43 = vpop.f32.mrb[23].mxu0 }
 0x2a6   : > { %v2414_v38 = vsel %vm2353_vm12, %v2398_v8, %v4007_v32  ;;  %v2415_v27 = vsel %vm2353_vm12, %v2399_v37, %v4008_v23 }
 0x2a7   : > { %v4011_v19 = vpop.permute.xlu0 %4010  ;;  %v2437_v34 = vpack.c.bf16 %v2415_v27, %v2414_v38 }
 0x2a8   : > { %v4013_v3 = vunpack.i.h.bf16 %v4011_v19  ;;  %v4012_v0 = vunpack.i.l.bf16 %v4011_v19 }
 0x2a9   : > { %2697 = vmatprep.mubr.bf16.mxu1 %v2437_v34 }
 0x2aa   : > { %2698 = vmatmul.mubr.bf16.gmra.mrb[24].mxu1 %v2436_v61  ;;  %v2385_v22 = vsel %vm1419_vm5, %v5176_v55, %v4013_v3  ;;  %v2384_v5 = vsel %vm1419_vm5, %v5184_v58, %v4012_v0 }
 0x2ab   : > { %v4016_v35 = vpop.permute.xlu0 %4015 }
 0x2ac   : > { %v4018_v18 = vunpack.i.h.bf16 %v4016_v35  ;;  %v4017_v59 = vunpack.i.l.bf16 %v4016_v35 }
 0x2ae   : > { %v2400_v26 = vsel %vm1503_vm9, %v2384_v5, %v4017_v59  ;;  %v2401_v42 = vsel %vm1503_vm9, %v2385_v22, %v4018_v18 }
 0x2af   : > { %v4021_v51 = vpop.permute.xlu0 %4020 }
 0x2b0   : > { %v4023_v10 = vunpack.i.h.bf16 %v4021_v51  ;;  %v4022_v9 = vunpack.i.l.bf16 %v4021_v51 }
 0x2b2   : > { %v2416_v20 = vsel %vm2353_vm12, %v2400_v26, %v4022_v9  ;;  %v2417_v11 = vsel %vm2353_vm12, %v2401_v42, %v4023_v10 }
 0x2b3   : > { %v2440_v4 = vpack.c.bf16 %v2417_v11, %v2416_v20 }
 0x2b5   : > { %2705 = vmatprep.mubr.bf16.mxu1 %v2440_v4 }
 0x2b6   : > { %2706 = vmatmul.mubr.bf16.gmra.mrb[28].mxu1 %v2439_v48 }
 0x2c1   : > { %v5376_v55 = vpop.f32.mrb[24].mxu0 }
 0x2c2   : > { %v5378_v58 = vpop.f32.mrb[25].mxu0 }
 0x2c3   : > { %v5380_v25 = vpop.f32.mrb[26].mxu0 }
 0x2c4   : > { %v5382_v31 = vpop.f32.mrb[27].mxu0 }
 0x2e1   : > { %v5384_v16 = vpop.f32.mrb[28].mxu0 }
 0x2e2   : > { %v5386_v14 = vpop.f32.mrb[29].mxu0 }
 0x2e3   : > { %v5388_v53 = vpop.f32.mrb[30].mxu0 }
 0x2e4   : > { %v5390_v6 = vpop.f32.mrb[31].mxu0 }
 0x301   : > { %v5392_v12 = vpop.f32.mrb[32].mxu0 }
 0x302   : > { %v5394_v2 = vpop.f32.mrb[33].mxu0 }
 0x303   : > { %v5396_v56 = vpop.f32.mrb[34].mxu0 }
 0x304   : > { %v5398_v13 = vpop.f32.mrb[35].mxu0 }
 0x327   : > { %v3198_v49 = vpop.f32.mrb[0].mxu1 }
 0x328   : > { %v3199_v50 = vpop.f32.mrb[1].mxu1 }
 0x329   : > { %v3200_v36 = vadd.f32 %v3199_v50, %v3198_v49  ;;  %v3201_v24 = vpop.f32.mrb[2].mxu1 }
 0x32a   : > { %v3202_v62 = vpop.f32.mrb[3].mxu1 }
 0x32b   : > { %v2652_v33 = vadd.f32 %v3200_v36, %v5403_v28  ;;  %v3203_v23 = vadd.f32 %v3202_v62, %v3201_v24 }
 0x32d   : > { %v2749_v32 = vadd.f32 %v5342_v1, %v2652_v33  ;;  %v2655_v8 = vadd.f32 %v3203_v23, %v5403_v28 }
 0x32f   : > { %v3137_v37 = vmul.f32 -1.442695, %v2749_v32  ;;  %v2752_v7 = vadd.f32 %v5352_v43, %v2655_v8  ;;  %v3204_v54 = vpop.f32.mrb[4].mxu1 }
 0x330   : > { %v3205_v21 = vpop.f32.mrb[5].mxu1 }
 0x331   : > { %4052 = vpow2.f32 %v3137_v37  ;;  %v3138_v38 = vmul.f32 -1.442695, %v2752_v7  ;;  %v3206_v27 = vadd.f32 %v3205_v21, %v3204_v54  ;;  %v3207_v19 = vpop.f32.mrb[6].mxu1 }
 0x332   : > { %v3208_v34 = vpop.f32.mrb[7].mxu1 }
 0x333   : > { %4054 = vpow2.f32 %v3138_v38  ;;  %v2660_v61 = vadd.f32 %v3206_v27, %v5403_v28  ;;  %v3209_v41 = vadd.f32 %v3208_v34, %v3207_v19 }
 0x335   : > { %v2757_v1 = vadd.f32 %v5338_v15, %v2660_v61  ;;  %v2663_v57 = vadd.f32 %v3209_v41, %v5403_v28 }
 0x337   : > { %v3139_v45 = vmul.f32 -1.442695, %v2757_v1  ;;  %v2760_v43 = vadd.f32 %v5346_v30, %v2663_v57 }
 0x339   : > { %4056 = vpow2.f32 %v3139_v45  ;;  %v3140_v46 = vmul.f32 -1.442695, %v2760_v43 }
 0x33b   : > { %v4053_v29 = vpop.eup %4052  ;;  %4058 = vpow2.f32 %v3140_v46 }
 0x33c   : > { %v2859_v35 = vadd.f32 1.0, %v4053_v29 }
 0x33d   : > { %v4055_v3 = vpop.eup %4054 }
 0x33e   : > { %4060 = vrcp.f32 %v2859_v35  ;;  %v2860_v0 = vadd.f32 1.0, %v4055_v3 }
 0x340   : > { %4062 = vrcp.f32 %v2860_v0 }
 0x343   : > { %v4057_v52 = vpop.eup %4056 }
 0x344   : > { %v2861_v44 = vadd.f32 1.0, %v4057_v52 }
 0x345   : > { %v4059_v15 = vpop.eup %4058 }
 0x346   : > { %4064 = vrcp.f32 %v2861_v44  ;;  %v2862_v18 = vadd.f32 1.0, %v4059_v15 }
 0x347   : > { %v3210_v59 = vpop.f32.mrb[8].mxu1 }
 0x348   : > { %v4061_v40 = vpop.eup %4060  ;;  %4066 = vrcp.f32 %v2862_v18  ;;  %v3211_v30 = vpop.f32.mrb[9].mxu1 }
 0x349   : > { %2907 = vst.msk [vmem:[%s5416_s22] sm:$0xff] %vm1377_vm3, %v4061_v40  ;;  %v3212_v17 = vadd.f32 %v3211_v30, %v3210_v59  ;;  %v3213_v60 = vpop.f32.mrb[10].mxu1 }
 0x34a   : > { %v4063_v39 = vpop.eup %4062  ;;  %v3214_v51 = vpop.f32.mrb[11].mxu1 }
 0x34b   : > { %2908 = vst.msk [vmem:[%s5416_s22 + $0x8] sm:$0xff] %vm1377_vm3, %v4063_v39  ;;  %v2668_v22 = vadd.f32 %v3212_v17, %v5403_v28  ;;  %v3215_v5 = vadd.f32 %v3214_v51, %v3213_v60 }
 0x34d   : > { %v2765_v10 = vadd.f32 %v5378_v58, %v2668_v22  ;;  %v2671_v9 = vadd.f32 %v3215_v5, %v5403_v28 }
 0x34f   : > { %v3141_v26 = vmul.f32 -1.442695, %v2765_v10  ;;  %v2768_v42 = vadd.f32 %v5382_v31, %v2671_v9  ;;  %v3216_v63 = vpop.f32.mrb[12].mxu1 }
 0x350   : > { %v4065_v47 = vpop.eup %4064  ;;  %v3217_v20 = vpop.f32.mrb[13].mxu1 }
 0x351   : > { %2909 = vst.msk [vmem:[%s5416_s22 + $0x10] sm:$0xff] %vm1377_vm3, %v4065_v47  ;;  %4068 = vpow2.f32 %v3141_v26  ;;  %v3142_v11 = vmul.f32 -1.442695, %v2768_v42  ;;  %v3218_v4 = vadd.f32 %v3217_v20, %v3216_v63  ;;  %v3219_v48 = vpop.f32.mrb[14].mxu1 }
 0x352   : > { %v4067_v49 = vpop.eup %4066  ;;  %v3220_v50 = vpop.f32.mrb[15].mxu1 }
 0x353   : > { %2910 = vst.msk [vmem:[%s5416_s22 + $0x18] sm:$0xff] %vm1377_vm3, %v4067_v49  ;;  %4070 = vpow2.f32 %v3142_v11  ;;  %v2676_v58 = vadd.f32 %v3218_v4, %v5403_v28  ;;  %v3221_v36 = vadd.f32 %v3220_v50, %v3219_v48 }
 0x355   : > { %v2773_v24 = vadd.f32 %v5376_v55, %v2676_v58  ;;  %v2679_v31 = vadd.f32 %v3221_v36, %v5403_v28 }
 0x357   : > { %v3143_v62 = vmul.f32 -1.442695, %v2773_v24  ;;  %v2776_v33 = vadd.f32 %v5380_v25, %v2679_v31 }
 0x359   : > { %4072 = vpow2.f32 %v3143_v62  ;;  %v3144_v23 = vmul.f32 -1.442695, %v2776_v33 }
 0x35b   : > { %v4069_v32 = vpop.eup %4068  ;;  %4074 = vpow2.f32 %v3144_v23 }
 0x35c   : > { %v2863_v8 = vadd.f32 1.0, %v4069_v32 }
 0x35d   : > { %v4071_v37 = vpop.eup %4070 }
 0x35e   : > { %4076 = vrcp.f32 %v2863_v8  ;;  %v2864_v7 = vadd.f32 1.0, %v4071_v37 }
 0x360   : > { %4078 = vrcp.f32 %v2864_v7 }
 0x363   : > { %v4073_v54 = vpop.eup %4072 }
 0x364   : > { %v2865_v21 = vadd.f32 1.0, %v4073_v54 }
 0x365   : > { %v4075_v38 = vpop.eup %4074 }
 0x366   : > { %4080 = vrcp.f32 %v2865_v21  ;;  %v2866_v55 = vadd.f32 1.0, %v4075_v38 }
 0x367   : > { %v3222_v27 = vpop.f32.mrb[16].mxu1 }
 0x368   : > { %v4077_v19 = vpop.eup %4076  ;;  %4082 = vrcp.f32 %v2866_v55  ;;  %v3223_v25 = vpop.f32.mrb[17].mxu1 }
 0x369   : > { %2911 = vst.msk [vmem:[%s5416_s22 + $0x20] sm:$0xff] %vm1377_vm3, %v4077_v19  ;;  %v3224_v34 = vadd.f32 %v3223_v25, %v3222_v27  ;;  %v3225_v61 = vpop.f32.mrb[18].mxu1 }
 0x36a   : > { %v4079_v41 = vpop.eup %4078  ;;  %v3226_v1 = vpop.f32.mrb[19].mxu1 }
 0x36b   : > { %2912 = vst.msk [vmem:[%s5416_s22 + $0x28] sm:$0xff] %vm1377_vm3, %v4079_v41  ;;  %v2684_v57 = vadd.f32 %v3224_v34, %v5403_v28  ;;  %v3227_v45 = vadd.f32 %v3226_v1, %v3225_v61 }
 0x36d   : > { %v2781_v43 = vadd.f32 %v5386_v14, %v2684_v57  ;;  %v2687_v46 = vadd.f32 %v3227_v45, %v5403_v28 }
 0x36f   : > { %v3145_v29 = vmul.f32 -1.442695, %v2781_v43  ;;  %v2784_v35 = vadd.f32 %v5390_v6, %v2687_v46  ;;  %v3228_v3 = vpop.f32.mrb[20].mxu1 }
 0x370   : > { %v4081_v0 = vpop.eup %4080  ;;  %v3229_v52 = vpop.f32.mrb[21].mxu1 }
 0x371   : > { %2913 = vst.msk [vmem:[%s5416_s22 + $0x30] sm:$0xff] %vm1377_vm3, %v4081_v0  ;;  %4084 = vpow2.f32 %v3145_v29  ;;  %v3146_v44 = vmul.f32 -1.442695, %v2784_v35  ;;  %v3230_v15 = vadd.f32 %v3229_v52, %v3228_v3  ;;  %v3231_v18 = vpop.f32.mrb[22].mxu1 }
 0x372   : > { %v4083_v59 = vpop.eup %4082  ;;  %v3232_v40 = vpop.f32.mrb[23].mxu1 }
 0x373   : > { %2914 = vst.msk [vmem:[%s5416_s22 + $0x38] sm:$0xff] %vm1377_vm3, %v4083_v59  ;;  %4086 = vpow2.f32 %v3146_v44  ;;  %v2692_v14 = vadd.f32 %v3230_v15, %v5403_v28  ;;  %v3233_v30 = vadd.f32 %v3232_v40, %v3231_v18 }
 0x375   : > { %v2789_v17 = vadd.f32 %v5384_v16, %v2692_v14  ;;  %v2695_v6 = vadd.f32 %v3233_v30, %v5403_v28 }
 0x377   : > { %v3147_v60 = vmul.f32 -1.442695, %v2789_v17  ;;  %v2792_v39 = vadd.f32 %v5388_v53, %v2695_v6 }
 0x379   : > { %4088 = vpow2.f32 %v3147_v60  ;;  %v3148_v51 = vmul.f32 -1.442695, %v2792_v39 }
 0x37b   : > { %v4085_v22 = vpop.eup %4084  ;;  %4090 = vpow2.f32 %v3148_v51 }
 0x37c   : > { %v2867_v5 = vadd.f32 1.0, %v4085_v22 }
 0x37d   : > { %v3234_v10 = vpop.f32.mrb[24].mxu1  ;;  %v4087_v9 = vpop.eup %4086 }
 0x37e   : > { %v3235_v26 = vpop.f32.mrb[25].mxu1  ;;  %4092 = vrcp.f32 %v2867_v5  ;;  %v2868_v42 = vadd.f32 1.0, %v4087_v9 }
 0x37f   : > { %v3236_v63 = vadd.f32 %v3235_v26, %v3234_v10  ;;  %v3237_v47 = vpop.f32.mrb[26].mxu1 }
 0x380   : > { %v3238_v20 = vpop.f32.mrb[27].mxu1  ;;  %4094 = vrcp.f32 %v2868_v42 }
 0x381   : > { %v2700_v16 = vadd.f32 %v3236_v63, %v5403_v28  ;;  %v3239_v11 = vadd.f32 %v3238_v20, %v3237_v47 }
 0x383   : > { %v2797_v53 = vadd.f32 %v5394_v2, %v2700_v16  ;;  %v2703_v4 = vadd.f32 %v3239_v11, %v5403_v28  ;;  %v4089_v48 = vpop.eup %4088 }
 0x384   : > { %v2869_v49 = vadd.f32 1.0, %v4089_v48 }
 0x385   : > { %v3149_v50 = vmul.f32 -1.442695, %v2797_v53  ;;  %v2800_v58 = vadd.f32 %v5398_v13, %v2703_v4  ;;  %v4091_v36 = vpop.eup %4090 }
 0x386   : > { %4096 = vrcp.f32 %v2869_v49  ;;  %v2870_v24 = vadd.f32 1.0, %v4091_v36 }
 0x387   : > { %v3150_v31 = vmul.f32 -1.442695, %v2800_v58  ;;  %4098 = vpow2.f32 %v3149_v50 }
 0x388   : > { %v4093_v62 = vpop.eup %4092  ;;  %4100 = vrcp.f32 %v2870_v24 }
 0x389   : > { %v3240_v33 = vpop.f32.mrb[28].mxu1  ;;  %2915 = vst.msk [vmem:[%s5416_s22 + $0x40] sm:$0xff] %vm1377_vm3, %v4093_v62  ;;  %4102 = vpow2.f32 %v3150_v31 }
 0x38a   : > { %v3241_v2 = vpop.f32.mrb[29].mxu1  ;;  %v4095_v23 = vpop.eup %4094 }
 0x38b   : > { %v3242_v32 = vadd.f32 %v3241_v2, %v3240_v33  ;;  %v3243_v8 = vpop.f32.mrb[30].mxu1  ;;  %2916 = vst.msk [vmem:[%s5416_s22 + $0x48] sm:$0xff] %vm1377_vm3, %v4095_v23 }
 0x38c   : > { %v3244_v13 = vpop.f32.mrb[31].mxu1 }
 0x38d   : > { %v2708_v37 = vadd.f32 %v3242_v32, %v5403_v28  ;;  %v3245_v7 = vadd.f32 %v3244_v13, %v3243_v8 }
 0x38f   : > { %v2805_v54 = vadd.f32 %v5392_v12, %v2708_v37  ;;  %v2711_v21 = vadd.f32 %v3245_v7, %v5403_v28 }
 0x390   : > { %v4097_v38 = vpop.eup %4096 }
 0x391   : > { %v3151_v55 = vmul.f32 -1.442695, %v2805_v54  ;;  %v2808_v27 = vadd.f32 %v5396_v56, %v2711_v21  ;;  %v4099_v19 = vpop.eup %4098  ;;  %2917 = vst.msk [vmem:[%s5416_s22 + $0x50] sm:$0xff] %vm1377_vm3, %v4097_v38 }
 0x392   : > { %v4101_v25 = vpop.eup %4100  ;;  %v2871_v34 = vadd.f32 1.0, %v4099_v19 }
 0x393   : > { %4104 = vpow2.f32 %v3151_v55  ;;  %v3152_v61 = vmul.f32 -1.442695, %v2808_v27  ;;  %v4103_v41 = vpop.eup %4102  ;;  %2918 = vst.msk [vmem:[%s5416_s22 + $0x58] sm:$0xff] %vm1377_vm3, %v4101_v25 }
 0x394   : > { %4106 = vrcp.f32 %v2871_v34  ;;  %v2872_v12 = vadd.f32 1.0, %v4103_v41 }
 0x395   : > { %4108 = vpow2.f32 %v3152_v61 }
 0x396   : > { %4110 = vrcp.f32 %v2872_v12 }
 0x39d   : > { %v4105_v56 = vpop.eup %4104 }
 0x39e   : > { %v2873_v28 = vadd.f32 1.0, %v4105_v56  ;;  %v4107_v1 = vpop.eup %4106 }
 0x39f   : > { %v4109_v57 = vpop.eup %4108  ;;  %2919 = vst.msk [vmem:[%s5416_s22 + $0x60] sm:$0xff] %vm1377_vm3, %v4107_v1 }
 0x3a0   : > { %4112 = vrcp.f32 %v2873_v28  ;;  %v4111_v45 = vpop.eup %4110  ;;  %v2874_v43 = vadd.f32 1.0, %v4109_v57 }
 0x3a1   : > { %2920 = vst.msk [vmem:[%s5416_s22 + $0x68] sm:$0xff] %vm1377_vm3, %v4111_v45 }
 0x3a2   : > { %4114 = vrcp.f32 %v2874_v43 }
 0x3aa   : > { %v4113_v46 = vpop.eup %4112 }
 0x3ab   : > { %2921 = vst.msk [vmem:[%s5416_s22 + $0x70] sm:$0xff] %vm1377_vm3, %v4113_v46 }
 0x3ac   : > { %v4115_v29 = vpop.eup %4114 }
 0x3ad   : > { %2922 = vst.msk [vmem:[%s5416_s22 + $0x78] sm:$0xff] %vm1377_vm3, %v4115_v29 }
 0x3ae   : > { %4129 = shalt.err (!%p4126_p0)
}
 0x3af   : > { %s4130_s9 = scalar_lea.hbm %s5478_s13, 2048  ;;  %s4134_s0 = scalar_lea.hbm %s5546_s7, 8192 }
 0x3b0   : > { %p4131_p1 = scmp.ne.s32.totalorder %s5478_s13, %s4130_s9  ;;  %p4135_p5 = scmp.lt.u32.totalorder %s5478_s13, %s5546_s7 }
 0x3b1   : > { %p4136_p6 = scmp.lt.u32.totalorder %s4134_s0, %s4130_s9  ;;  %p4138_p9 = scmp.lt.u32.totalorder %s4130_s9, %s5478_s13 }
 0x3b2   : > { %p4132_p2 = pnand %p4131_p1, %p4315_p3 }
 0x3b3   : > { %p4137_p7 = por %p4136_p6, %p4135_p5 }
 0x3b4   : > { %p4133_p4 = pneg %p4132_p2 }
 0x3b5   : > { %p4139_p10 = por %p4138_p9, %p4137_p7 }
 0x3b7   : > { %p4140_p11 = pnand %p4139_p10, %p4133_p4 }
 0x3b9   : > { %4143 = shalt.err (!%p4140_p11)
}
 0x3ba   : > { %s4223_s28 = smov 128  }
 0x3bb   : > { %3307 = dma.vmem_to_hbm [thread:$0]  (%p4315_p3), %s5480_s16, 2048, %s5478_s13, %s5486_s27, %s4223_s28, %s4223_s28, %s4218_s21  }
 0x3bc PF: > { %p3313_p12 = scmp.ge.s32.totalorder %s4210_s8, 2  ;;  %s2955_s12 = sand.u32 1, %s4182_s24  }
 0x3bd   : > { %s2956_s17 = scalar_lea.sflag [#allocation5], %s2955_s12 }
 0x3be   : > { %p3310_p13 = pnand %p3313_p12, %p4324_p8 }
 0x3c0   : > { %4177 = dma.done.wait (!%p3310_p13), %s2956_s17, 2048  }
 0x3c1   : > { %4179 = vsyncadd (!%p3310_p13), %s2956_s17, 4294965248  ;;  %s20_s8 = sadd.s32 1, %s4210_s8   ;;  %s5563_s14 = sld [smem:[#allocation7_spill]] }
 0x3c2   : > { %p17_p0 = scmp.ge.s32.totalorder %s20_s8, 6   ;;  %s5564_s24 = smov %s4186_s25 }
 0x3c3   : > { %s5565_s25 = smov %s4190_s26  ;;  %s5566_s26 = smov %s4333_s19 }
 0x3c4   : > { %s5567_s27 = smov %s4202_s29  ;;  %s5568_s28 = smov %s4206_s30 }
 0x3c5   : > { %s5569_s29 = smov %s5572_s11  ;;  %19 = sbr.rel (!%p17_p0) target bundleno = 7 (0x7), region = 95 }
 0x3c7   : > { %s5570_s30 = smov %s5563_s14 }
 0x3cc   :  { %2961 = vsyncpa [#allocation5], 1 }
 0x3cd   :  { %2963 = vsyncpa [#allocation5 + $0x1], 1 }

</bundles_post_ra>
